<compile_context>
chip_gen: v7x
topology: tpu7x:2x2x1
jax: 0.10.0
libtpu: 0.0.40
codegen_flags: <defaults>
</compile_context>

<pallas_src>
import jax
import jax.numpy as jnp
from jax.experimental import pallas as pl
from jax.experimental.pallas import tpu as pltpu

EPS = 1e-5
COMPUTE_DTYPE = jnp.bfloat16      # MXU operand dtype (f32 accumulation / BN)
_USE_ROLL = False                 # set by _probe_roll() below


def _probe_roll():
    """True iff pltpu.roll lowers here and matches jnp.roll semantics on the
    sublane axis; otherwise the kernel uses the zero-concat shift fallback."""
    def k(x_ref, o_ref):
        o_ref[...] = pltpu.roll(x_ref[...], shift=3, axis=0)
    x = jnp.arange(8 * 128, dtype=jnp.float32).reshape(8, 128)
    try:
        y = pl.pallas_call(
            k, out_shape=jax.ShapeDtypeStruct((8, 128), jnp.float32))(x)
        return bool(jnp.array_equal(y, jnp.roll(x, 3, axis=0)))
    except Exception:
        return False


_USE_ROLL = _probe_roll()


def up_block_kernel(x_ref, skip_ref, wt_e_ref, wt_o_ref, b_up_ref,
                    w1u_ref, w1s_ref, b1_ref, g1_ref, be1_ref,
                    w2_ref, b2_ref, g2_ref, be2_ref, out_ref):
    """All refs live in VMEM; activation layout is NLC (length on sublanes,
    channels on lanes).  "Even"/"odd" are position parities in the full
    upsampled sequence of length Ls = 2*Lx; phase arrays have shape (N,Lx,C).
    skip_ref packs [even || odd] on the lane axis; out_ref likewise."""
    x = x_ref[...]                                     # (N, Lx, Cin) bf16
    n, lx, _ = x.shape
    cdt = x.dtype

    def mm(a, w):
        """(N, Lx, F) x (F, O) -> (N, Lx, O) f32; one MXU matmul."""
        f = a.shape[-1]
        y = jnp.dot(a.reshape(n * lx, f), w,
                    preferred_element_type=jnp.float32)
        return y.reshape(n, lx, -1)

    def shift_rows(p, s):
        """b[:, m, :] = p[:, m + s, :], zero-filled outside [0, Lx)."""
        if s == 0:
            return p
        if _USE_ROLL:
            rolled = pltpu.roll(p, shift=(-s) % lx, axis=1)     # XLU rotate
            pos = jax.lax.broadcasted_iota(jnp.int32, p.shape, 1)
            mask = (pos < lx - s) if s > 0 else (pos >= -s)
            return jnp.where(mask, rolled, 0.0)
        # fallback: zero-fill concat along the sublane axis
        z = jnp.zeros((n, abs(s), p.shape[-1]), p.dtype)
        if s > 0:
            return jnp.concatenate([p[:, s:, :], z], axis=1)
        return jnp.concatenate([z, p[:, :lx + s, :]], axis=1)

    def conv_same(streams, b_ref):
        """padding='same' Conv1d over the interleaved (even/odd) sequence,
        evaluated per output phase as per-tap accumulating matmuls (no
        im2col).  streams: [(h_e, h_o, w_ref)], w_ref shape (K, C_i, Cout)."""
        k_taps = streams[0][2].shape[0]
        pad_l = (k_taps - 1) // 2                      # PyTorch 'same', odd K
        c_o = b_ref.shape[-1]
        bias = jnp.broadcast_to(b_ref[...], (n, lx, c_o))       # hoisted, f32
        acc_e, acc_o = bias, bias
        for h_e, h_o, w_ref in streams:
            for k in range(k_taps):                    # static unroll over taps
                d = k - pad_l                          # tap offset in full seq
                w_k = w_ref[k]                         # (C_i, Cout) bf16
                if d % 2 == 0:
                    acc_e = acc_e + shift_rows(mm(h_e, w_k), d // 2)
                    acc_o = acc_o + shift_rows(mm(h_o, w_k), d // 2)
                else:
                    acc_e = acc_e + shift_rows(mm(h_o, w_k), (d - 1) // 2)
                    acc_o = acc_o + shift_rows(mm(h_e, w_k), (d + 1) // 2)
        return acc_e, acc_o

    def bn_relu(y_e, y_o, g_ref, be_ref):
        """Training-mode BatchNorm1d over both phases (i.e. over (N, Ls)),
        one-pass sum / sum-of-squares statistics, affine + ReLU.  All f32."""
        cnt = 2.0 * n * lx
        tot = (jnp.sum(y_e, axis=(0, 1), keepdims=True) +
               jnp.sum(y_o, axis=(0, 1), keepdims=True))
        tot2 = (jnp.sum(y_e * y_e, axis=(0, 1), keepdims=True) +
                jnp.sum(y_o * y_o, axis=(0, 1), keepdims=True))
        mean = tot / cnt
        var = jnp.maximum(tot2 / cnt - mean * mean, 0.0)
        scale = jax.lax.rsqrt(var + EPS) * g_ref[...]
        shift = be_ref[...] - mean * scale
        return (jnp.maximum(y_e * scale + shift, 0.0),
                jnp.maximum(y_o * scale + shift, 0.0))

    # --- ConvTranspose1d(kernel=2, stride=2): pure polyphase, two matmuls ----
    c_up = wt_e_ref.shape[-1]
    b_up = jnp.broadcast_to(b_up_ref[...], (n, lx, c_up))        # hoisted
    up_e = (mm(x, wt_e_ref[...]) + b_up).astype(cdt)             # even positions
    up_o = (mm(x, wt_o_ref[...]) + b_up).astype(cdt)             # odd positions

    # --- skip phases: pre-packed [even || odd] on lanes, sliced once ---------
    skip_cat = skip_ref[...]
    c_sk = skip_cat.shape[-1] // 2
    skip_e = skip_cat[:, :, :c_sk]
    skip_o = skip_cat[:, :, c_sk:]

    # --- ConvBlock: (Conv1d 'same' -> BN -> ReLU) x 2 ------------------------
    # conv1: channel concat with the skip replaced by split-weight accumulation
    y_e, y_o = conv_same([(up_e, up_o, w1u_ref), (skip_e, skip_o, w1s_ref)],
                         b1_ref)
    h_e, h_o = bn_relu(y_e, y_o, g1_ref, be1_ref)

    y_e, y_o = conv_same([(h_e.astype(cdt), h_o.astype(cdt), w2_ref)], b2_ref)
    h_e, h_o = bn_relu(y_e, y_o, g2_ref, be2_ref)

    # --- single lane-dense store: [even Cout || odd Cout] --------------------
    out_ref[...] = jnp.concatenate([h_e, h_o], axis=-1).astype(out_ref.dtype)


def _full_spec(shape):
    nd = len(shape)
    return pl.BlockSpec(shape, lambda i, _nd=nd: (0,) * _nd)


@jax.jit
def up_block(x, skip, wt, b_up, w1, b1, g1, beta1, w2, b2, g2, beta2):
    """x: (N, Cin, Lx); skip: (N, Csk, Ls) with Ls == 2*Lx (PyTorch NCL).
    Returns (N, Cout, Ls) in float32."""
    n, c_in, lx = x.shape
    _, c_sk, ls = skip.shape
    c_up = wt.shape[1]                          # ConvTranspose1d out_channels
    c_out, c_tot, k = w1.shape
    assert ls == 2 * lx, "diff != 0 path not implemented (see TODO(synk))"
    assert k % 2 == 1, "padding='same' phase split implemented for odd K"
    assert c_tot == c_up + c_sk

    cdt, f32 = COMPUTE_DTYPE, jnp.float32

    # glue: NCL -> NLC, even/odd phase packing, bf16 MXU operands
    x_nlc = jnp.transpose(x, (0, 2, 1)).astype(cdt)              # (N, Lx, Cin)
    skip_cat = (jnp.transpose(skip, (0, 2, 1))                   # (N, Ls, Csk)
                .reshape(n, lx, 2 * c_sk).astype(cdt))           # [even||odd]

    # glue: weights -> matmul RHS layouts (per-tap row blocks, up/skip split)
    wt_e = wt[:, :, 0].astype(cdt)                               # (Cin, Cup)
    wt_o = wt[:, :, 1].astype(cdt)
    w1_t = jnp.transpose(w1, (2, 1, 0))                          # (K, Ctot, Cout)
    w1_up = w1_t[:, :c_up, :].astype(cdt)                        # (K, Cup, Cout)
    w1_sk = w1_t[:, c_up:, :].astype(cdt)                        # (K, Csk, Cout)
    w2_t = jnp.transpose(w2, (2, 1, 0)).astype(cdt)              # (K, Cout, Cout)

    def row(v):
        return v.reshape(1, 1, -1).astype(f32)

    inputs = (x_nlc, skip_cat, wt_e, wt_o, row(b_up),
              w1_up, w1_sk, row(b1), row(g1), row(beta1),
              w2_t, row(b2), row(g2), row(beta2))

    out_shape = (n, lx, 2 * c_out)
    flops = 4 * n * lx * (c_in * c_up + k * c_tot * c_out + k * c_out * c_out)
    bytes_accessed = int(sum(a.size * a.dtype.itemsize for a in inputs)
                         + n * lx * 2 * c_out * 4)

    out = pl.pallas_call(
        up_block_kernel,
        out_shape=jax.ShapeDtypeStruct(out_shape, f32),
        grid=(1,),
        in_specs=[_full_spec(a.shape) for a in inputs],
        out_specs=_full_spec(out_shape),
        compiler_params=pltpu.CompilerParams(
            dimension_semantics=("arbitrary",),
            # above the 16/32 MiB scoped defaults, below every chip's physical
            # VMEM (64 MiB v7x / 128 MiB v5e/v6e)
            vmem_limit_bytes=48 * 1024 * 1024),
        cost_estimate=pl.CostEstimate(flops=flops, transcendentals=2 * c_out,
                                      bytes_accessed=bytes_accessed),
    )(*inputs)

    # glue: [even||odd] lanes -> interleaved length Ls (free view), back to NCL
    out_nlc = out.reshape(n, ls, c_out)
    return jnp.transpose(out_nlc, (0, 2, 1))


def reference_forward(x, skip, wt, b_up, w1, b1, g1, beta1, w2, b2, g2, beta2,
                      matmul_dtype=jnp.float32):
    """Plain-JAX replica of the PyTorch UpBlock forward (training-mode BN).
    matmul_dtype=bfloat16 emulates the kernel's bf16 MXU operand precision."""
    hi = jax.lax.Precision.HIGHEST
    cd = matmul_dtype

    # ConvTranspose1d(k=2, s=2, p=0) == conv of the 2x-dilated input with the
    # flipped, (out,in)-transposed weight, padded by k-1 on both sides.
    w_conv = jnp.flip(jnp.transpose(wt, (1, 0, 2)), axis=-1)     # (Cup, Cin, 2)
    up = jax.lax.conv_general_dilated(
        x.astype(cd), w_conv.astype(cd), window_strides=(1,), padding=[(1, 1)],
        lhs_dilation=(2,), dimension_numbers=("NCH", "OIH", "NCH"),
        preferred_element_type=jnp.float32, precision=hi)
    up = up + b_up[None, :, None]

    diff = skip.shape[-1] - up.shape[-1]
    up = jnp.pad(up, ((0, 0), (0, 0), (diff // 2, diff - diff // 2)))
    h = jnp.concatenate([up, skip], axis=1)

    def block(h, w, b, g, beta):
        kk = w.shape[-1]
        pad_l = (kk - 1) // 2
        y = jax.lax.conv_general_dilated(
            h.astype(cd), w.astype(cd), window_strides=(1,),
            padding=[(pad_l, kk - 1 - pad_l)],
            dimension_numbers=("NCH", "OIH", "NCH"),
            preferred_element_type=jnp.float32, precision=hi)
        y = y + b[None, :, None]
        mean = jnp.mean(y, axis=(0, 2), keepdims=True)
        var = jnp.mean((y - mean) ** 2, axis=(0, 2), keepdims=True)
        yh = (y - mean) * jax.lax.rsqrt(var + EPS)
        return jnp.maximum(yh * g[None, :, None] + beta[None, :, None], 0.0)

    h = block(h, w1, b1, g1, beta1)
    h = block(h, w2, b2, g2, beta2)
    return h


if __name__ == "__main__":
    # Shapes consistent with a UNet decoder stage:
    #   x:    (N, in_channels, Lx)                         -> upsampled to 2*Lx
    #   skip: (N, in_channels - out_channels, 2*Lx)
    n, c_in, c_out, lx, k = 2, 8, 4, 8, 3
    c_sk, ls = c_in - c_out, 2 * lx

    key = jax.random.PRNGKey(0)
    (kx, ksk, kwt, kbt, kw1, kb1, kg1, kbe1,
     kw2, kb2, kg2, kbe2) = jax.random.split(key, 12)

    x = jax.random.normal(kx, (n, c_in, lx), dtype=jnp.float32)
    skip = jax.random.normal(ksk, (n, c_sk, ls), dtype=jnp.float32)

    wt = jax.random.normal(kwt, (c_in, c_out, 2), dtype=jnp.float32) * 0.3
    b_up = jax.random.normal(kbt, (c_out,), dtype=jnp.float32) * 0.1
    w1 = jax.random.normal(kw1, (c_out, c_in, k), dtype=jnp.float32) * 0.3
    b1 = jax.random.normal(kb1, (c_out,), dtype=jnp.float32) * 0.1
    g1 = 1.0 + 0.1 * jax.random.normal(kg1, (c_out,), dtype=jnp.float32)
    beta1 = 0.1 * jax.random.normal(kbe1, (c_out,), dtype=jnp.float32)
    w2 = jax.random.normal(kw2, (c_out, c_out, k), dtype=jnp.float32) * 0.3
    b2 = jax.random.normal(kb2, (c_out,), dtype=jnp.float32) * 0.1
    g2 = 1.0 + 0.1 * jax.random.normal(kg2, (c_out,), dtype=jnp.float32)
    beta2 = 0.1 * jax.random.normal(kbe2, (c_out,), dtype=jnp.float32)

    args = (x, skip, wt, b_up, w1, b1, g1, beta1, w2, b2, g2, beta2)

    out = jax.block_until_ready(up_block(*args))
    assert out.shape == (n, c_out, ls), out.shape

    # Strict check against a reference that matches the kernel's bf16 MXU
    # operand precision (f32 accumulation / BN), loose check against pure f32.
    ref_bf16 = reference_forward(*args, matmul_dtype=COMPUTE_DTYPE)
    ref_f32 = reference_forward(*args, matmul_dtype=jnp.float32)
    err_bf16 = float(jnp.max(jnp.abs(out - ref_bf16)))
    err_f32 = float(jnp.max(jnp.abs(out - ref_f32)))
    assert err_bf16 < 3e-3, (err_bf16, err_f32)
    assert err_f32 < 1e-1, (err_bf16, err_f32)
    print("KERNEL_OK")
</pallas_src>

<mosaic_0001>
module attributes {stable_mosaic.version = 11 : i64} {
  func.func @k(%arg0: memref<8x128xf32, #tpu.memory_space<vmem>>, %arg1: memref<8x128xf32, #tpu.memory_space<vmem>>) attributes {dimension_semantics = [], scalar_prefetch = 0 : i64, scratch_operands = 0 : i64, tpu.core_type = #tpu.core_type<tc>} {
    %c0 = arith.constant 0 : index
    %c0_0 = arith.constant 0 : index
    %0 = vector.load %arg0[%c0, %c0_0] : memref<8x128xf32, #tpu.memory_space<vmem>>, vector<8x128xf32>
    %c3_i32 = arith.constant 3 : i32
    %1 = tpu.dynamic_rotate %0 by %c3_i32 dim 0 : vector<8x128xf32>, i32 -> vector<8x128xf32>
    %c0_1 = arith.constant 0 : index
    %c0_2 = arith.constant 0 : index
    %2 = vector.load %arg1[%c0_1, %c0_2] : memref<8x128xf32, #tpu.memory_space<vmem>>, vector<8x128xf32>
    tpu.vector_store %arg1[%c0_1, %c0_2], %1 {strides = array<i32>} : memref<8x128xf32, #tpu.memory_space<vmem>>, vector<8x128xf32>,
    return
  }
}

module attributes {stable_mosaic.version = 11 : i64} {
  func.func @up_block_kernel(%arg0: i32, %arg1: memref<2x8x8xbf16, #tpu.memory_space<vmem>>, %arg2: memref<2x8x8xbf16, #tpu.memory_space<vmem>>, %arg3: memref<8x4xbf16, #tpu.memory_space<vmem>>, %arg4: memref<8x4xbf16, #tpu.memory_space<vmem>>, %arg5: memref<1x1x4xf32, #tpu.memory_space<vmem>>, %arg6: memref<3x4x4xbf16, #tpu.memory_space<vmem>>, %arg7: memref<3x4x4xbf16, #tpu.memory_space<vmem>>, %arg8: memref<1x1x4xf32, #tpu.memory_space<vmem>>, %arg9: memref<1x1x4xf32, #tpu.memory_space<vmem>>, %arg10: memref<1x1x4xf32, #tpu.memory_space<vmem>>, %arg11: memref<3x4x4xbf16, #tpu.memory_space<vmem>>, %arg12: memref<1x1x4xf32, #tpu.memory_space<vmem>>, %arg13: memref<1x1x4xf32, #tpu.memory_space<vmem>>, %arg14: memref<1x1x4xf32, #tpu.memory_space<vmem>>, %arg15: memref<2x8x8xf32, #tpu.memory_space<vmem>>) attributes {dimension_semantics = [#tpu.dimension_semantics<arbitrary>], iteration_bounds = array<i64: 1>, scalar_prefetch = 0 : i64, scratch_operands = 0 : i64, tpu.core_type = #tpu.core_type<tc>, window_params = [{pipeline_mode = #tpu.pipeline_mode<synchronous>, transform_indices = @transform_0, window_bounds = array<i64: 2, 8, 8>}, {pipeline_mode = #tpu.pipeline_mode<synchronous>, transform_indices = @transform_1, window_bounds = array<i64: 2, 8, 8>}, {pipeline_mode = #tpu.pipeline_mode<synchronous>, transform_indices = @transform_2, window_bounds = array<i64: 8, 4>}, {pipeline_mode = #tpu.pipeline_mode<synchronous>, transform_indices = @transform_3, window_bounds = array<i64: 8, 4>}, {pipeline_mode = #tpu.pipeline_mode<synchronous>, transform_indices = @transform_4, window_bounds = array<i64: 1, 1, 4>}, {pipeline_mode = #tpu.pipeline_mode<synchronous>, transform_indices = @transform_5, window_bounds = array<i64: 3, 4, 4>}, {pipeline_mode = #tpu.pipeline_mode<synchronous>, transform_indices = @transform_6, window_bounds = array<i64: 3, 4, 4>}, {pipeline_mode = #tpu.pipeline_mode<synchronous>, transform_indices = @transform_7, window_bounds = array<i64: 1, 1, 4>}, {pipeline_mode = #tpu.pipeline_mode<synchronous>, transform_indices = @transform_8, window_bounds = array<i64: 1, 1, 4>}, {pipeline_mode = #tpu.pipeline_mode<synchronous>, transform_indices = @transform_9, window_bounds = array<i64: 1, 1, 4>}, {pipeline_mode = #tpu.pipeline_mode<synchronous>, transform_indices = @transform_10, window_bounds = array<i64: 3, 4, 4>}, {pipeline_mode = #tpu.pipeline_mode<synchronous>, transform_indices = @transform_11, window_bounds = array<i64: 1, 1, 4>}, {pipeline_mode = #tpu.pipeline_mode<synchronous>, transform_indices = @transform_12, window_bounds = array<i64: 1, 1, 4>}, {pipeline_mode = #tpu.pipeline_mode<synchronous>, transform_indices = @transform_13, window_bounds = array<i64: 1, 1, 4>}, {pipeline_mode = #tpu.pipeline_mode<synchronous>, transform_indices = @transform_14, window_bounds = array<i64: 2, 8, 8>}]} {
    %c0 = arith.constant 0 : index
    %c0_0 = arith.constant 0 : index
    %c0_1 = arith.constant 0 : index
    %0 = vector.load %arg1[%c0, %c0_0, %c0_1] : memref<2x8x8xbf16, #tpu.memory_space<vmem>>, vector<2x8x8xbf16>
    %c0_2 = arith.constant 0 : index
    %c0_3 = arith.constant 0 : index
    %c0_4 = arith.constant 0 : index
    %1 = vector.load %arg5[%c0_2, %c0_3, %c0_4] : memref<1x1x4xf32, #tpu.memory_space<vmem>>, vector<1x1x4xf32>
    %2 = vector.shape_cast %1 : vector<1x1x4xf32> to vector<1x1x4xf32>
    %3 = vector.broadcast %2 : vector<1x1x4xf32> to vector<2x8x4xf32>
    %c0_5 = arith.constant 0 : index
    %c0_6 = arith.constant 0 : index
    %4 = vector.load %arg3[%c0_5, %c0_6] : memref<8x4xbf16, #tpu.memory_space<vmem>>, vector<8x4xbf16>
    %5 = vector.shape_cast %0 : vector<2x8x8xbf16> to vector<16x8xbf16>
    %cst = arith.constant dense<0.000000e+00> : vector<16x4xf32>
    %6 = tpu.matmul %5, %4, %cst {dimension_numbers = #tpu.dot_dimension_numbers<[1], [0], [0], [1], [0, 0, 1, 1], [], []>} : vector<16x8xbf16>, vector<8x4xbf16>, vector<16x4xf32> -> vector<16x4xf32>
    %7 = vector.shape_cast %6 : vector<16x4xf32> to vector<2x8x4xf32>
    %8 = arith.addf %7, %3 : vector<2x8x4xf32>
    %9 = arith.truncf %8 : vector<2x8x4xf32> to vector<2x8x4xbf16>
    %c0_7 = arith.constant 0 : index
    %c0_8 = arith.constant 0 : index
    %10 = vector.load %arg4[%c0_7, %c0_8] : memref<8x4xbf16, #tpu.memory_space<vmem>>, vector<8x4xbf16>
    %11 = vector.shape_cast %0 : vector<2x8x8xbf16> to vector<16x8xbf16>
    %cst_9 = arith.constant dense<0.000000e+00> : vector<16x4xf32>
    %12 = tpu.matmul %11, %10, %cst_9 {dimension_numbers = #tpu.dot_dimension_numbers<[1], [0], [0], [1], [0, 0, 1, 1], [], []>} : vector<16x8xbf16>, vector<8x4xbf16>, vector<16x4xf32> -> vector<16x4xf32>
    %13 = vector.shape_cast %12 : vector<16x4xf32> to vector<2x8x4xf32>
    %14 = arith.addf %13, %3 : vector<2x8x4xf32>
    %15 = arith.truncf %14 : vector<2x8x4xf32> to vector<2x8x4xbf16>
    %c0_10 = arith.constant 0 : index
    %c0_11 = arith.constant 0 : index
    %c0_12 = arith.constant 0 : index
    %16 = vector.load %arg2[%c0_10, %c0_11, %c0_12] : memref<2x8x8xbf16, #tpu.memory_space<vmem>>, vector<2x8x8xbf16>
    %17 = vector.extract_strided_slice %16 {offsets = [0, 0, 0], sizes = [2, 8, 4], strides = [1, 1, 1]} : vector<2x8x8xbf16> to vector<2x8x4xbf16>
    %18 = vector.extract_strided_slice %16 {offsets = [0, 0, 4], sizes = [2, 8, 4], strides = [1, 1, 1]} : vector<2x8x8xbf16> to vector<2x8x4xbf16>
    %c0_13 = arith.constant 0 : index
    %c0_14 = arith.constant 0 : index
    %c0_15 = arith.constant 0 : index
    %19 = vector.load %arg8[%c0_13, %c0_14, %c0_15] : memref<1x1x4xf32, #tpu.memory_space<vmem>>, vector<1x1x4xf32>
    %20 = vector.shape_cast %19 : vector<1x1x4xf32> to vector<1x1x4xf32>
    %21 = vector.broadcast %20 : vector<1x1x4xf32> to vector<2x8x4xf32>
    %c0_16 = arith.constant 0 : index
    %c0_17 = arith.constant 0 : index
    %c0_18 = arith.constant 0 : index
    %22 = vector.load %arg6[%c0_16, %c0_17, %c0_18] : memref<3x4x4xbf16, #tpu.memory_space<vmem>>, vector<1x4x4xbf16>
    %23 = vector.shape_cast %22 : vector<1x4x4xbf16> to vector<4x4xbf16>
    %24 = vector.shape_cast %15 : vector<2x8x4xbf16> to vector<16x4xbf16>
    %cst_19 = arith.constant dense<0.000000e+00> : vector<16x4xf32>
    %25 = tpu.matmul %24, %23, %cst_19 {dimension_numbers = #tpu.dot_dimension_numbers<[1], [0], [0], [1], [0, 0, 1, 1], [], []>} : vector<16x4xbf16>, vector<4x4xbf16>, vector<16x4xf32> -> vector<16x4xf32>
    %26 = vector.shape_cast %25 : vector<16x4xf32> to vector<2x8x4xf32>
    %cst_20 = arith.constant 0.000000e+00 : f32
    %27 = vector.broadcast %cst_20 : f32 to vector<2x1x4xf32>
    %28 = vector.extract_strided_slice %26 {offsets = [0, 0, 0], sizes = [2, 7, 4], strides = [1, 1, 1]} : vector<2x8x4xf32> to vector<2x7x4xf32>
    %29 = tpu.concatenate %27, %28 in 1 : vector<2x1x4xf32>, vector<2x7x4xf32> -> vector<2x8x4xf32>
    %30 = arith.addf %21, %29 : vector<2x8x4xf32>
    %31 = vector.shape_cast %9 : vector<2x8x4xbf16> to vector<16x4xbf16>
    %cst_21 = arith.constant dense<0.000000e+00> : vector<16x4xf32>
    %32 = tpu.matmul %31, %23, %cst_21 {dimension_numbers = #tpu.dot_dimension_numbers<[1], [0], [0], [1], [0, 0, 1, 1], [], []>} : vector<16x4xbf16>, vector<4x4xbf16>, vector<16x4xf32> -> vector<16x4xf32>
    %33 = vector.shape_cast %32 : vector<16x4xf32> to vector<2x8x4xf32>
    %34 = arith.addf %21, %33 : vector<2x8x4xf32>
    %c1 = arith.constant 1 : index
    %c0_22 = arith.constant 0 : index
    %c0_23 = arith.constant 0 : index
    %35 = vector.load %arg6[%c1, %c0_22, %c0_23] : memref<3x4x4xbf16, #tpu.memory_space<vmem>>, vector<1x4x4xbf16>
    %36 = vector.shape_cast %35 : vector<1x4x4xbf16> to vector<4x4xbf16>
    %37 = vector.shape_cast %9 : vector<2x8x4xbf16> to vector<16x4xbf16>
    %cst_24 = arith.constant dense<0.000000e+00> : vector<16x4xf32>
    %38 = tpu.matmul %37, %36, %cst_24 {dimension_numbers = #tpu.dot_dimension_numbers<[1], [0], [0], [1], [0, 0, 1, 1], [], []>} : vector<16x4xbf16>, vector<4x4xbf16>, vector<16x4xf32> -> vector<16x4xf32>
    %39 = vector.shape_cast %38 : vector<16x4xf32> to vector<2x8x4xf32>
    %40 = arith.addf %30, %39 : vector<2x8x4xf32>
    %41 = vector.shape_cast %15 : vector<2x8x4xbf16> to vector<16x4xbf16>
    %cst_25 = arith.constant dense<0.000000e+00> : vector<16x4xf32>
    %42 = tpu.matmul %41, %36, %cst_25 {dimension_numbers = #tpu.dot_dimension_numbers<[1], [0], [0], [1], [0, 0, 1, 1], [], []>} : vector<16x4xbf16>, vector<4x4xbf16>, vector<16x4xf32> -> vector<16x4xf32>
    %43 = vector.shape_cast %42 : vector<16x4xf32> to vector<2x8x4xf32>
    %44 = arith.addf %34, %43 : vector<2x8x4xf32>
    %c2 = arith.constant 2 : index
    %c0_26 = arith.constant 0 : index
    %c0_27 = arith.constant 0 : index
    %45 = vector.load %arg6[%c2, %c0_26, %c0_27] : memref<3x4x4xbf16, #tpu.memory_space<vmem>>, vector<1x4x4xbf16>
    %46 = vector.shape_cast %45 : vector<1x4x4xbf16> to vector<4x4xbf16>
    %47 = vector.shape_cast %15 : vector<2x8x4xbf16> to vector<16x4xbf16>
    %cst_28 = arith.constant dense<0.000000e+00> : vector<16x4xf32>
    %48 = tpu.matmul %47, %46, %cst_28 {dimension_numbers = #tpu.dot_dimension_numbers<[1], [0], [0], [1], [0, 0, 1, 1], [], []>} : vector<16x4xbf16>, vector<4x4xbf16>, vector<16x4xf32> -> vector<16x4xf32>
    %49 = vector.shape_cast %48 : vector<16x4xf32> to vector<2x8x4xf32>
    %50 = arith.addf %40, %49 : vector<2x8x4xf32>
    %51 = vector.shape_cast %9 : vector<2x8x4xbf16> to vector<16x4xbf16>
    %cst_29 = arith.constant dense<0.000000e+00> : vector<16x4xf32>
    %52 = tpu.matmul %51, %46, %cst_29 {dimension_numbers = #tpu.dot_dimension_numbers<[1], [0], [0], [1], [0, 0, 1, 1], [], []>} : vector<16x4xbf16>, vector<4x4xbf16>, vector<16x4xf32> -> vector<16x4xf32>
    %53 = vector.shape_cast %52 : vector<16x4xf32> to vector<2x8x4xf32>
    %cst_30 = arith.constant 0.000000e+00 : f32
    %54 = vector.broadcast %cst_30 : f32 to vector<2x1x4xf32>
    %55 = vector.extract_strided_slice %53 {offsets = [0, 1, 0], sizes = [2, 7, 4], strides = [1, 1, 1]} : vector<2x8x4xf32> to vector<2x7x4xf32>
    %56 = tpu.concatenate %55, %54 in 1 : vector<2x7x4xf32>, vector<2x1x4xf32> -> vector<2x8x4xf32>
    %57 = arith.addf %44, %56 : vector<2x8x4xf32>
    %c0_31 = arith.constant 0 : index
    %c0_32 = arith.constant 0 : index
    %c0_33 = arith.constant 0 : index
    %58 = vector.load %arg7[%c0_31, %c0_32, %c0_33] : memref<3x4x4xbf16, #tpu.memory_space<vmem>>, vector<1x4x4xbf16>
    %59 = vector.shape_cast %58 : vector<1x4x4xbf16> to vector<4x4xbf16>
    %60 = vector.shape_cast %18 : vector<2x8x4xbf16> to vector<16x4xbf16>
    %cst_34 = arith.constant dense<0.000000e+00> : vector<16x4xf32>
    %61 = tpu.matmul %60, %59, %cst_34 {dimension_numbers = #tpu.dot_dimension_numbers<[1], [0], [0], [1], [0, 0, 1, 1], [], []>} : vector<16x4xbf16>, vector<4x4xbf16>, vector<16x4xf32> -> vector<16x4xf32>
    %62 = vector.shape_cast %61 : vector<16x4xf32> to vector<2x8x4xf32>
    %cst_35 = arith.constant 0.000000e+00 : f32
    %63 = vector.broadcast %cst_35 : f32 to vector<2x1x4xf32>
    %64 = vector.extract_strided_slice %62 {offsets = [0, 0, 0], sizes = [2, 7, 4], strides = [1, 1, 1]} : vector<2x8x4xf32> to vector<2x7x4xf32>
    %65 = tpu.concatenate %63, %64 in 1 : vector<2x1x4xf32>, vector<2x7x4xf32> -> vector<2x8x4xf32>
    %66 = arith.addf %50, %65 : vector<2x8x4xf32>
    %67 = vector.shape_cast %17 : vector<2x8x4xbf16> to vector<16x4xbf16>
    %cst_36 = arith.constant dense<0.000000e+00> : vector<16x4xf32>
    %68 = tpu.matmul %67, %59, %cst_36 {dimension_numbers = #tpu.dot_dimension_numbers<[1], [0], [0], [1], [0, 0, 1, 1], [], []>} : vector<16x4xbf16>, vector<4x4xbf16>, vector<16x4xf32> -> vector<16x4xf32>
    %69 = vector.shape_cast %68 : vector<16x4xf32> to vector<2x8x4xf32>
    %70 = arith.addf %57, %69 : vector<2x8x4xf32>
    %c1_37 = arith.constant 1 : index
    %c0_38 = arith.constant 0 : index
    %c0_39 = arith.constant 0 : index
    %71 = vector.load %arg7[%c1_37, %c0_38, %c0_39] : memref<3x4x4xbf16, #tpu.memory_space<vmem>>, vector<1x4x4xbf16>
    %72 = vector.shape_cast %71 : vector<1x4x4xbf16> to vector<4x4xbf16>
    %73 = vector.shape_cast %17 : vector<2x8x4xbf16> to vector<16x4xbf16>
    %cst_40 = arith.constant dense<0.000000e+00> : vector<16x4xf32>
    %74 = tpu.matmul %73, %72, %cst_40 {dimension_numbers = #tpu.dot_dimension_numbers<[1], [0], [0], [1], [0, 0, 1, 1], [], []>} : vector<16x4xbf16>, vector<4x4xbf16>, vector<16x4xf32> -> vector<16x4xf32>
    %75 = vector.shape_cast %74 : vector<16x4xf32> to vector<2x8x4xf32>
    %76 = arith.addf %66, %75 : vector<2x8x4xf32>
    %77 = vector.shape_cast %18 : vector<2x8x4xbf16> to vector<16x4xbf16>
    %cst_41 = arith.constant dense<0.000000e+00> : vector<16x4xf32>
    %78 = tpu.matmul %77, %72, %cst_41 {dimension_numbers = #tpu.dot_dimension_numbers<[1], [0], [0], [1], [0, 0, 1, 1], [], []>} : vector<16x4xbf16>, vector<4x4xbf16>, vector<16x4xf32> -> vector<16x4xf32>
    %79 = vector.shape_cast %78 : vector<16x4xf32> to vector<2x8x4xf32>
    %80 = arith.addf %70, %79 : vector<2x8x4xf32>
    %c2_42 = arith.constant 2 : index
    %c0_43 = arith.constant 0 : index
    %c0_44 = arith.constant 0 : index
    %81 = vector.load %arg7[%c2_42, %c0_43, %c0_44] : memref<3x4x4xbf16, #tpu.memory_space<vmem>>, vector<1x4x4xbf16>
    %82 = vector.shape_cast %81 : vector<1x4x4xbf16> to vector<4x4xbf16>
    %83 = vector.shape_cast %18 : vector<2x8x4xbf16> to vector<16x4xbf16>
    %cst_45 = arith.constant dense<0.000000e+00> : vector<16x4xf32>
    %84 = tpu.matmul %83, %82, %cst_45 {dimension_numbers = #tpu.dot_dimension_numbers<[1], [0], [0], [1], [0, 0, 1, 1], [], []>} : vector<16x4xbf16>, vector<4x4xbf16>, vector<16x4xf32> -> vector<16x4xf32>
    %85 = vector.shape_cast %84 : vector<16x4xf32> to vector<2x8x4xf32>
    %86 = arith.addf %76, %85 : vector<2x8x4xf32>
    %87 = vector.shape_cast %17 : vector<2x8x4xbf16> to vector<16x4xbf16>
    %cst_46 = arith.constant dense<0.000000e+00> : vector<16x4xf32>
    %88 = tpu.matmul %87, %82, %cst_46 {dimension_numbers = #tpu.dot_dimension_numbers<[1], [0], [0], [1], [0, 0, 1, 1], [], []>} : vector<16x4xbf16>, vector<4x4xbf16>, vector<16x4xf32> -> vector<16x4xf32>
    %89 = vector.shape_cast %88 : vector<16x4xf32> to vector<2x8x4xf32>
    %cst_47 = arith.constant 0.000000e+00 : f32
    %90 = vector.broadcast %cst_47 : f32 to vector<2x1x4xf32>
    %91 = vector.extract_strided_slice %89 {offsets = [0, 1, 0], sizes = [2, 7, 4], strides = [1, 1, 1]} : vector<2x8x4xf32> to vector<2x7x4xf32>
    %92 = tpu.concatenate %91, %90 in 1 : vector<2x7x4xf32>, vector<2x1x4xf32> -> vector<2x8x4xf32>
    %93 = arith.addf %80, %92 : vector<2x8x4xf32>
    %cst_48 = arith.constant dense<0.000000e+00> : vector<4xf32>
    %94 = vector.multi_reduction <add>, %86, %cst_48 [0, 1] : vector<2x8x4xf32> to vector<4xf32>
    %95 = vector.shape_cast %94 : vector<4xf32> to vector<1x1x4xf32>
    %cst_49 = arith.constant dense<0.000000e+00> : vector<4xf32>
    %96 = vector.multi_reduction <add>, %93, %cst_49 [0, 1] : vector<2x8x4xf32> to vector<4xf32>
    %97 = vector.shape_cast %96 : vector<4xf32> to vector<1x1x4xf32>
    %98 = arith.addf %95, %97 : vector<1x1x4xf32>
    %99 = arith.mulf %86, %86 : vector<2x8x4xf32>
    %cst_50 = arith.constant dense<0.000000e+00> : vector<4xf32>
    %100 = vector.multi_reduction <add>, %99, %cst_50 [0, 1] : vector<2x8x4xf32> to vector<4xf32>
    %101 = vector.shape_cast %100 : vector<4xf32> to vector<1x1x4xf32>
    %102 = arith.mulf %93, %93 : vector<2x8x4xf32>
    %cst_51 = arith.constant dense<0.000000e+00> : vector<4xf32>
    %103 = vector.multi_reduction <add>, %102, %cst_51 [0, 1] : vector<2x8x4xf32> to vector<4xf32>
    %104 = vector.shape_cast %103 : vector<4xf32> to vector<1x1x4xf32>
    %105 = arith.addf %101, %104 : vector<1x1x4xf32>
    %cst_52 = arith.constant 3.200000e+01 : f32
    %106 = vector.broadcast %cst_52 : f32 to vector<1x1x4xf32>
    %107 = arith.divf %98, %106 : vector<1x1x4xf32>
    %cst_53 = arith.constant 3.200000e+01 : f32
    %108 = vector.broadcast %cst_53 : f32 to vector<1x1x4xf32>
    %109 = arith.divf %105, %108 : vector<1x1x4xf32>
    %110 = arith.mulf %107, %107 : vector<1x1x4xf32>
    %111 = arith.subf %109, %110 : vector<1x1x4xf32>
    %cst_54 = arith.constant 0.000000e+00 : f32
    %112 = vector.broadcast %cst_54 : f32 to vector<1x1x4xf32>
    %113 = arith.maximumf %111, %112 : vector<1x1x4xf32>
    %cst_55 = arith.constant 9.99999974E-6 : f32
    %114 = vector.broadcast %cst_55 : f32 to vector<1x1x4xf32>
    %115 = arith.addf %113, %114 : vector<1x1x4xf32>
    %116 = math.rsqrt %115 : vector<1x1x4xf32>
    %c0_56 = arith.constant 0 : index
    %c0_57 = arith.constant 0 : index
    %c0_58 = arith.constant 0 : index
    %117 = vector.load %arg9[%c0_56, %c0_57, %c0_58] : memref<1x1x4xf32, #tpu.memory_space<vmem>>, vector<1x1x4xf32>
    %118 = arith.mulf %116, %117 : vector<1x1x4xf32>
    %c0_59 = arith.constant 0 : index
    %c0_60 = arith.constant 0 : index
    %c0_61 = arith.constant 0 : index
    %119 = vector.load %arg10[%c0_59, %c0_60, %c0_61] : memref<1x1x4xf32, #tpu.memory_space<vmem>>, vector<1x1x4xf32>
    %120 = arith.mulf %107, %118 : vector<1x1x4xf32>
    %121 = arith.subf %119, %120 : vector<1x1x4xf32>
    %122 = vector.broadcast %118 : vector<1x1x4xf32> to vector<2x8x4xf32>
    %123 = arith.mulf %86, %122 : vector<2x8x4xf32>
    %124 = vector.broadcast %121 : vector<1x1x4xf32> to vector<2x8x4xf32>
    %125 = arith.addf %123, %124 : vector<2x8x4xf32>
    %cst_62 = arith.constant 0.000000e+00 : f32
    %126 = vector.broadcast %cst_62 : f32 to vector<2x8x4xf32>
    %127 = arith.maximumf %125, %126 : vector<2x8x4xf32>
    %128 = vector.broadcast %118 : vector<1x1x4xf32> to vector<2x8x4xf32>
    %129 = arith.mulf %93, %128 : vector<2x8x4xf32>
    %130 = vector.broadcast %121 : vector<1x1x4xf32> to vector<2x8x4xf32>
    %131 = arith.addf %129, %130 : vector<2x8x4xf32>
    %cst_63 = arith.constant 0.000000e+00 : f32
    %132 = vector.broadcast %cst_63 : f32 to vector<2x8x4xf32>
    %133 = arith.maximumf %131, %132 : vector<2x8x4xf32>
    %134 = arith.truncf %127 : vector<2x8x4xf32> to vector<2x8x4xbf16>
    %135 = arith.truncf %133 : vector<2x8x4xf32> to vector<2x8x4xbf16>
    %c0_64 = arith.constant 0 : index
    %c0_65 = arith.constant 0 : index
    %c0_66 = arith.constant 0 : index
    %136 = vector.load %arg12[%c0_64, %c0_65, %c0_66] : memref<1x1x4xf32, #tpu.memory_space<vmem>>, vector<1x1x4xf32>
    %137 = vector.shape_cast %136 : vector<1x1x4xf32> to vector<1x1x4xf32>
    %138 = vector.broadcast %137 : vector<1x1x4xf32> to vector<2x8x4xf32>
    %c0_67 = arith.constant 0 : index
    %c0_68 = arith.constant 0 : index
    %c0_69 = arith.constant 0 : index
    %139 = vector.load %arg11[%c0_67, %c0_68, %c0_69] : memref<3x4x4xbf16, #tpu.memory_space<vmem>>, vector<1x4x4xbf16>
    %140 = vector.shape_cast %139 : vector<1x4x4xbf16> to vector<4x4xbf16>
    %141 = vector.shape_cast %135 : vector<2x8x4xbf16> to vector<16x4xbf16>
    %cst_70 = arith.constant dense<0.000000e+00> : vector<16x4xf32>
    %142 = tpu.matmul %141, %140, %cst_70 {dimension_numbers = #tpu.dot_dimension_numbers<[1], [0], [0], [1], [0, 0, 1, 1], [], []>} : vector<16x4xbf16>, vector<4x4xbf16>, vector<16x4xf32> -> vector<16x4xf32>
    %143 = vector.shape_cast %142 : vector<16x4xf32> to vector<2x8x4xf32>
    %cst_71 = arith.constant 0.000000e+00 : f32
    %144 = vector.broadcast %cst_71 : f32 to vector<2x1x4xf32>
    %145 = vector.extract_strided_slice %143 {offsets = [0, 0, 0], sizes = [2, 7, 4], strides = [1, 1, 1]} : vector<2x8x4xf32> to vector<2x7x4xf32>
    %146 = tpu.concatenate %144, %145 in 1 : vector<2x1x4xf32>, vector<2x7x4xf32> -> vector<2x8x4xf32>
    %147 = arith.addf %138, %146 : vector<2x8x4xf32>
    %148 = vector.shape_cast %134 : vector<2x8x4xbf16> to vector<16x4xbf16>
    %cst_72 = arith.constant dense<0.000000e+00> : vector<16x4xf32>
    %149 = tpu.matmul %148, %140, %cst_72 {dimension_numbers = #tpu.dot_dimension_numbers<[1], [0], [0], [1], [0, 0, 1, 1], [], []>} : vector<16x4xbf16>, vector<4x4xbf16>, vector<16x4xf32> -> vector<16x4xf32>
    %150 = vector.shape_cast %149 : vector<16x4xf32> to vector<2x8x4xf32>
    %151 = arith.addf %138, %150 : vector<2x8x4xf32>
    %c1_73 = arith.constant 1 : index
    %c0_74 = arith.constant 0 : index
    %c0_75 = arith.constant 0 : index
    %152 = vector.load %arg11[%c1_73, %c0_74, %c0_75] : memref<3x4x4xbf16, #tpu.memory_space<vmem>>, vector<1x4x4xbf16>
    %153 = vector.shape_cast %152 : vector<1x4x4xbf16> to vector<4x4xbf16>
    %154 = vector.shape_cast %134 : vector<2x8x4xbf16> to vector<16x4xbf16>
    %cst_76 = arith.constant dense<0.000000e+00> : vector<16x4xf32>
    %155 = tpu.matmul %154, %153, %cst_76 {dimension_numbers = #tpu.dot_dimension_numbers<[1], [0], [0], [1], [0, 0, 1, 1], [], []>} : vector<16x4xbf16>, vector<4x4xbf16>, vector<16x4xf32> -> vector<16x4xf32>
    %156 = vector.shape_cast %155 : vector<16x4xf32> to vector<2x8x4xf32>
    %157 = arith.addf %147, %156 : vector<2x8x4xf32>
    %158 = vector.shape_cast %135 : vector<2x8x4xbf16> to vector<16x4xbf16>
    %cst_77 = arith.constant dense<0.000000e+00> : vector<16x4xf32>
    %159 = tpu.matmul %158, %153, %cst_77 {dimension_numbers = #tpu.dot_dimension_numbers<[1], [0], [0], [1], [0, 0, 1, 1], [], []>} : vector<16x4xbf16>, vector<4x4xbf16>, vector<16x4xf32> -> vector<16x4xf32>
    %160 = vector.shape_cast %159 : vector<16x4xf32> to vector<2x8x4xf32>
    %161 = arith.addf %151, %160 : vector<2x8x4xf32>
    %c2_78 = arith.constant 2 : index
    %c0_79 = arith.constant 0 : index
    %c0_80 = arith.constant 0 : index
    %162 = vector.load %arg11[%c2_78, %c0_79, %c0_80] : memref<3x4x4xbf16, #tpu.memory_space<vmem>>, vector<1x4x4xbf16>
    %163 = vector.shape_cast %162 : vector<1x4x4xbf16> to vector<4x4xbf16>
    %164 = vector.shape_cast %135 : vector<2x8x4xbf16> to vector<16x4xbf16>
    %cst_81 = arith.constant dense<0.000000e+00> : vector<16x4xf32>
    %165 = tpu.matmul %164, %163, %cst_81 {dimension_numbers = #tpu.dot_dimension_numbers<[1], [0], [0], [1], [0, 0, 1, 1], [], []>} : vector<16x4xbf16>, vector<4x4xbf16>, vector<16x4xf32> -> vector<16x4xf32>
    %166 = vector.shape_cast %165 : vector<16x4xf32> to vector<2x8x4xf32>
    %167 = arith.addf %157, %166 : vector<2x8x4xf32>
    %168 = vector.shape_cast %134 : vector<2x8x4xbf16> to vector<16x4xbf16>
    %cst_82 = arith.constant dense<0.000000e+00> : vector<16x4xf32>
    %169 = tpu.matmul %168, %163, %cst_82 {dimension_numbers = #tpu.dot_dimension_numbers<[1], [0], [0], [1], [0, 0, 1, 1], [], []>} : vector<16x4xbf16>, vector<4x4xbf16>, vector<16x4xf32> -> vector<16x4xf32>
    %170 = vector.shape_cast %169 : vector<16x4xf32> to vector<2x8x4xf32>
    %cst_83 = arith.constant 0.000000e+00 : f32
    %171 = vector.broadcast %cst_83 : f32 to vector<2x1x4xf32>
    %172 = vector.extract_strided_slice %170 {offsets = [0, 1, 0], sizes = [2, 7, 4], strides = [1, 1, 1]} : vector<2x8x4xf32> to vector<2x7x4xf32>
    %173 = tpu.concatenate %172, %171 in 1 : vector<2x7x4xf32>, vector<2x1x4xf32> -> vector<2x8x4xf32>
    %174 = arith.addf %161, %173 : vector<2x8x4xf32>
    %cst_84 = arith.constant dense<0.000000e+00> : vector<4xf32>
    %175 = vector.multi_reduction <add>, %167, %cst_84 [0, 1] : vector<2x8x4xf32> to vector<4xf32>
    %176 = vector.shape_cast %175 : vector<4xf32> to vector<1x1x4xf32>
    %cst_85 = arith.constant dense<0.000000e+00> : vector<4xf32>
    %177 = vector.multi_reduction <add>, %174, %cst_85 [0, 1] : vector<2x8x4xf32> to vector<4xf32>
    %178 = vector.shape_cast %177 : vector<4xf32> to vector<1x1x4xf32>
    %179 = arith.addf %176, %178 : vector<1x1x4xf32>
    %180 = arith.mulf %167, %167 : vector<2x8x4xf32>
    %cst_86 = arith.constant dense<0.000000e+00> : vector<4xf32>
    %181 = vector.multi_reduction <add>, %180, %cst_86 [0, 1] : vector<2x8x4xf32> to vector<4xf32>
    %182 = vector.shape_cast %181 : vector<4xf32> to vector<1x1x4xf32>
    %183 = arith.mulf %174, %174 : vector<2x8x4xf32>
    %cst_87 = arith.constant dense<0.000000e+00> : vector<4xf32>
    %184 = vector.multi_reduction <add>, %183, %cst_87 [0, 1] : vector<2x8x4xf32> to vector<4xf32>
    %185 = vector.shape_cast %184 : vector<4xf32> to vector<1x1x4xf32>
    %186 = arith.addf %182, %185 : vector<1x1x4xf32>
    %cst_88 = arith.constant 3.200000e+01 : f32
    %187 = vector.broadcast %cst_88 : f32 to vector<1x1x4xf32>
    %188 = arith.divf %179, %187 : vector<1x1x4xf32>
    %cst_89 = arith.constant 3.200000e+01 : f32
    %189 = vector.broadcast %cst_89 : f32 to vector<1x1x4xf32>
    %190 = arith.divf %186, %189 : vector<1x1x4xf32>
    %191 = arith.mulf %188, %188 : vector<1x1x4xf32>
    %192 = arith.subf %190, %191 : vector<1x1x4xf32>
    %cst_90 = arith.constant 0.000000e+00 : f32
    %193 = vector.broadcast %cst_90 : f32 to vector<1x1x4xf32>
    %194 = arith.maximumf %192, %193 : vector<1x1x4xf32>
    %cst_91 = arith.constant 9.99999974E-6 : f32
    %195 = vector.broadcast %cst_91 : f32 to vector<1x1x4xf32>
    %196 = arith.addf %194, %195 : vector<1x1x4xf32>
    %197 = math.rsqrt %196 : vector<1x1x4xf32>
    %c0_92 = arith.constant 0 : index
    %c0_93 = arith.constant 0 : index
    %c0_94 = arith.constant 0 : index
    %198 = vector.load %arg13[%c0_92, %c0_93, %c0_94] : memref<1x1x4xf32, #tpu.memory_space<vmem>>, vector<1x1x4xf32>
    %199 = arith.mulf %197, %198 : vector<1x1x4xf32>
    %c0_95 = arith.constant 0 : index
    %c0_96 = arith.constant 0 : index
    %c0_97 = arith.constant 0 : index
    %200 = vector.load %arg14[%c0_95, %c0_96, %c0_97] : memref<1x1x4xf32, #tpu.memory_space<vmem>>, vector<1x1x4xf32>
    %201 = arith.mulf %188, %199 : vector<1x1x4xf32>
    %202 = arith.subf %200, %201 : vector<1x1x4xf32>
    %203 = vector.broadcast %199 : vector<1x1x4xf32> to vector<2x8x4xf32>
    %204 = arith.mulf %167, %203 : vector<2x8x4xf32>
    %205 = vector.broadcast %202 : vector<1x1x4xf32> to vector<2x8x4xf32>
    %206 = arith.addf %204, %205 : vector<2x8x4xf32>
    %cst_98 = arith.constant 0.000000e+00 : f32
    %207 = vector.broadcast %cst_98 : f32 to vector<2x8x4xf32>
    %208 = arith.maximumf %206, %207 : vector<2x8x4xf32>
    %209 = vector.broadcast %199 : vector<1x1x4xf32> to vector<2x8x4xf32>
    %210 = arith.mulf %174, %209 : vector<2x8x4xf32>
    %211 = vector.broadcast %202 : vector<1x1x4xf32> to vector<2x8x4xf32>
    %212 = arith.addf %210, %211 : vector<2x8x4xf32>
    %cst_99 = arith.constant 0.000000e+00 : f32
    %213 = vector.broadcast %cst_99 : f32 to vector<2x8x4xf32>
    %214 = arith.maximumf %212, %213 : vector<2x8x4xf32>
    %215 = tpu.concatenate %208, %214 in 2 : vector<2x8x4xf32>, vector<2x8x4xf32> -> vector<2x8x8xf32>
    %c0_100 = arith.constant 0 : index
    %c0_101 = arith.constant 0 : index
    %c0_102 = arith.constant 0 : index
    %216 = vector.load %arg15[%c0_100, %c0_101, %c0_102] : memref<2x8x8xf32, #tpu.memory_space<vmem>>, vector<2x8x8xf32>
    tpu.vector_store %arg15[%c0_100, %c0_101, %c0_102], %215 {strides = array<i32>} : memref<2x8x8xf32, #tpu.memory_space<vmem>>, vector<2x8x8xf32>,
    return
  }
  func.func @transform_0(%arg0: i32) -> (i32, i32, i32) {
    %c0_i32 = arith.constant 0 : i32
    %c0_i32_0 = arith.constant 0 : i32
    %c0_i32_1 = arith.constant 0 : i32
    %c0_i32_2 = arith.constant 0 : i32
    return %c0_i32, %c0_i32_0, %c0_i32_1 : i32, i32, i32
  }
  func.func @transform_1(%arg0: i32) -> (i32, i32, i32) {
    %c0_i32 = arith.constant 0 : i32
    %c0_i32_0 = arith.constant 0 : i32
    %c0_i32_1 = arith.constant 0 : i32
    %c0_i32_2 = arith.constant 0 : i32
    return %c0_i32, %c0_i32_0, %c0_i32_1 : i32, i32, i32
  }
  func.func @transform_2(%arg0: i32) -> (i32, i32) {
    %c0_i32 = arith.constant 0 : i32
    %c0_i32_0 = arith.constant 0 : i32
    %c0_i32_1 = arith.constant 0 : i32
    return %c0_i32, %c0_i32_0 : i32, i32
  }
  func.func @transform_3(%arg0: i32) -> (i32, i32) {
    %c0_i32 = arith.constant 0 : i32
    %c0_i32_0 = arith.constant 0 : i32
    %c0_i32_1 = arith.constant 0 : i32
    return %c0_i32, %c0_i32_0 : i32, i32
  }
  func.func @transform_4(%arg0: i32) -> (i32, i32, i32) {
    %c0_i32 = arith.constant 0 : i32
    %c0_i32_0 = arith.constant 0 : i32
    %c0_i32_1 = arith.constant 0 : i32
    %c0_i32_2 = arith.constant 0 : i32
    return %c0_i32, %c0_i32_0, %c0_i32_1 : i32, i32, i32
  }
  func.func @transform_5(%arg0: i32) -> (i32, i32, i32) {
    %c0_i32 = arith.constant 0 : i32
    %c0_i32_0 = arith.constant 0 : i32
    %c0_i32_1 = arith.constant 0 : i32
    %c0_i32_2 = arith.constant 0 : i32
    return %c0_i32, %c0_i32_0, %c0_i32_1 : i32, i32, i32
  }
  func.func @transform_6(%arg0: i32) -> (i32, i32, i32) {
    %c0_i32 = arith.constant 0 : i32
    %c0_i32_0 = arith.constant 0 : i32
    %c0_i32_1 = arith.constant 0 : i32
    %c0_i32_2 = arith.constant 0 : i32
    return %c0_i32, %c0_i32_0, %c0_i32_1 : i32, i32, i32
  }
  func.func @transform_7(%arg0: i32) -> (i32, i32, i32) {
    %c0_i32 = arith.constant 0 : i32
    %c0_i32_0 = arith.constant 0 : i32
    %c0_i32_1 = arith.constant 0 : i32
    %c0_i32_2 = arith.constant 0 : i32
    return %c0_i32, %c0_i32_0, %c0_i32_1 : i32, i32, i32
  }
  func.func @transform_8(%arg0: i32) -> (i32, i32, i32) {
    %c0_i32 = arith.constant 0 : i32
    %c0_i32_0 = arith.constant 0 : i32
    %c0_i32_1 = arith.constant 0 : i32
    %c0_i32_2 = arith.constant 0 : i32
    return %c0_i32, %c0_i32_0, %c0_i32_1 : i32, i32, i32
  }
  func.func @transform_9(%arg0: i32) -> (i32, i32, i32) {
    %c0_i32 = arith.constant 0 : i32
    %c0_i32_0 = arith.constant 0 : i32
    %c0_i32_1 = arith.constant 0 : i32
    %c0_i32_2 = arith.constant 0 : i32
    return %c0_i32, %c0_i32_0, %c0_i32_1 : i32, i32, i32
  }
  func.func @transform_10(%arg0: i32) -> (i32, i32, i32) {
    %c0_i32 = arith.constant 0 : i32
    %c0_i32_0 = arith.constant 0 : i32
    %c0_i32_1 = arith.constant 0 : i32
    %c0_i32_2 = arith.constant 0 : i32
    return %c0_i32, %c0_i32_0, %c0_i32_1 : i32, i32, i32
  }
  func.func @transform_11(%arg0: i32) -> (i32, i32, i32) {
    %c0_i32 = arith.constant 0 : i32
    %c0_i32_0 = arith.constant 0 : i32
    %c0_i32_1 = arith.constant 0 : i32
    %c0_i32_2 = arith.constant 0 : i32
    return %c0_i32, %c0_i32_0, %c0_i32_1 : i32, i32, i32
  }
  func.func @transform_12(%arg0: i32) -> (i32, i32, i32) {
    %c0_i32 = arith.constant 0 : i32
    %c0_i32_0 = arith.constant 0 : i32
    %c0_i32_1 = arith.constant 0 : i32
    %c0_i32_2 = arith.constant 0 : i32
    return %c0_i32, %c0_i32_0, %c0_i32_1 : i32, i32, i32
  }
  func.func @transform_13(%arg0: i32) -> (i32, i32, i32) {
    %c0_i32 = arith.constant 0 : i32
    %c0_i32_0 = arith.constant 0 : i32
    %c0_i32_1 = arith.constant 0 : i32
    %c0_i32_2 = arith.constant 0 : i32
    return %c0_i32, %c0_i32_0, %c0_i32_1 : i32, i32, i32
  }
  func.func @transform_14(%arg0: i32) -> (i32, i32, i32) {
    %c0_i32 = arith.constant 0 : i32
    %c0_i32_0 = arith.constant 0 : i32
    %c0_i32_1 = arith.constant 0 : i32
    %c0_i32_2 = arith.constant 0 : i32
    return %c0_i32, %c0_i32_0, %c0_i32_1 : i32, i32, i32
  }
}

</mosaic_0001>

<bundles_post_ra>
// kernel: tpu_custom_call.1
= control target key start
LH: loop header
LB: loop body
LE: loop exit
PB: predicated region body
PF: predicated region fallthrough
CT: control target
= control target key end

     0   :  { %6 = vsyncpa [#allocation3], 0  ;;  %s125_s0 = inlined_call_operand.hbm [shape: f32[8,128], index: 0, kind: input, shape index: {}]   ;;  %s126_s1 = inlined_call_operand.hbm [shape: f32[8,128], index: 1, kind: output, shape index: {}]  }
   0x1   :  { %7 = vsyncpa [#allocation4], 0  ;;  %s89_s6 = smov [#allocation2]   ;;  %s41_s10 = scalar_lea.hbm %s125_s0, 128 }
   0x2   :  { %s14_s7 = sshll.u32 %s89_s6, 4  ;;  %p42_p0 = scmp.ne.s32.totalorder %s125_s0, %s41_s10  ;;  %s15_s7 = int_to_ptr.vmem [resolvable:$true] %s14_s7 }
   0x3   :  { %p45_p1 = scmp.lt.u32.totalorder %s41_s10, %s125_s0 }
   0x5   :  { %p47_p2 = pnand %p45_p1, %p42_p0 }
   0x7   :  { %50 = shalt.err (!%p47_p2)
}
   0x8   :  { %s51_s15 = scalar_lea.vmem %s15_s7, 128  ;;  %p56_p4 = scmp.lt.s32.totalorder %s15_s7, %s15_s7 }
   0x9   :  { %p52_p3 = scmp.ne.s32.totalorder %s15_s7, %s51_s15  ;;  %p57_p5 = scmp.lt.s32.totalorder %s51_s15, %s51_s15 }
   0xb   :  { %p58_p6 = por %p57_p5, %p56_p4 }
   0xd   :  { %p59_p7 = pnand %p58_p6, %p52_p3 }
   0xf   :  { %62 = shalt.err (!%p59_p7)
}
  0x10   :  { %17 = dma.hbm_to_vmem [thread:$0]  %s125_s0, 128, %s15_s7, [#allocation3]  }
  0x11   :  { %85 = dma.done.wait [#allocation3], 128  }
  0x12   :  { %86 = vsyncadd [#allocation3], 4294967168  ;;  %s90_s18 = smov [#allocation5]   ;;  %v21_v0 = vld [vmem:[#allocation2] sm:$0xff] }
  0x13   :  { %s30_s19 = sshll.u32 %s90_s18, 4  ;;  %v22_v1 = vrot.slane %v21_v0, 5  ;;  %s31_s19 = int_to_ptr.vmem [resolvable:$true] %s30_s19 }
  0x14   :  { %s63_s20 = scalar_lea.vmem %s31_s19, 128  ;;  %p68_p9 = scmp.lt.s32.totalorder %s31_s19, %s31_s19 }
  0x15   :  { %23 = vst [vmem:[#allocation5] sm:$0xff] %v22_v1  ;;  %p64_p8 = scmp.ne.s32.totalorder %s31_s19, %s63_s20  ;;  %p69_p10 = scmp.lt.s32.totalorder %s63_s20, %s63_s20 }
  0x17   :  { %p70_p11 = por %p69_p10, %p68_p9 }
  0x19   :  { %p71_p12 = pnand %p70_p11, %p64_p8 }
  0x1b   :  { %74 = shalt.err (!%p71_p12)
}
  0x1c   :  { %s75_s23 = scalar_lea.hbm %s126_s1, 128 }
  0x1d   :  { %p76_p13 = scmp.ne.s32.totalorder %s126_s1, %s75_s23  ;;  %p79_p0 = scmp.lt.u32.totalorder %s75_s23, %s126_s1 }
  0x1f   :  { %p81_p1 = pnand %p79_p0, %p76_p13 }
  0x21   :  { %84 = shalt.err (!%p81_p1)
}
  0x22   :  { %33 = dma.vmem_to_hbm [thread:$0]  %s31_s19, 128, %s126_s1, [#allocation4]  }
  0x23   :  { %87 = dma.done.wait [#allocation4], 128  }
  0x24   :  { %88 = vsyncadd [#allocation4], 4294967168 }
  0x25   :  { %37 = vsyncpa [#allocation3], 1 }
  0x26   :  { %38 = vsyncpa [#allocation4], 1 }

// kernel: up_block.1
= control target key start
LH: loop header
LB: loop body
LE: loop exit
PB: predicated region body
PF: predicated region fallthrough
CT: control target
= control target key end

     0   :  { %vm67_vm0 = vcmask 1043456   ;;  %vm63_vm1 = vcmask 64512   ;;  %v1498_v0 = vmov 0.0   ;;  %vm1499_vm2 = vmmov 0   ;;  %s1500_s21 = smov 124   ;;  %s1800_s2 = inlined_call_operand.vmem [shape: bf16[8,4], index: 2, kind: input, shape index: {}]   ;;  %s1801_s3 = inlined_call_operand.vmem [shape: bf16[8,4], index: 3, kind: input, shape index: {}]   ;;  %s1802_s0 = inlined_call_operand.vmem [shape: bf16[2,8,8], index: 0, kind: input, shape index: {}]   ;;  %s1803_s1 = inlined_call_operand.vmem [shape: bf16[2,8,8], index: 1, kind: input, shape index: {}]   ;;  %s1804_s5 = inlined_call_operand.vmem [shape: bf16[3,4,4], index: 5, kind: input, shape index: {}]   ;;  %s1805_s4 = inlined_call_operand.vmem [shape: f32[1,1,4], index: 4, kind: input, shape index: {}]   ;;  %s1806_s6 = inlined_call_operand.vmem [shape: bf16[3,4,4], index: 6, kind: input, shape index: {}]   ;;  %s1807_s10 = inlined_call_operand.vmem [shape: bf16[3,4,4], index: 10, kind: input, shape index: {}]   ;;  %s1808_s7 = inlined_call_operand.vmem [shape: f32[1,1,4], index: 7, kind: input, shape index: {}]   ;;  %s1809_s8 = inlined_call_operand.vmem [shape: f32[1,1,4], index: 8, kind: input, shape index: {}]   ;;  %s1810_s9 = inlined_call_operand.vmem [shape: f32[1,1,4], index: 9, kind: input, shape index: {}]   ;;  %s1811_s11 = inlined_call_operand.vmem [shape: f32[1,1,4], index: 11, kind: input, shape index: {}]   ;;  %s1812_s12 = inlined_call_operand.vmem [shape: f32[1,1,4], index: 12, kind: input, shape index: {}]   ;;  %s1813_s13 = inlined_call_operand.vmem [shape: f32[1,1,4], index: 13, kind: input, shape index: {}]   ;;  %s1814_s14 = inlined_call_operand.vmem [shape: f32[2,8,8], index: 14, kind: output, shape index: {}]  }
   0x1   :  { %1346 = vmatprep.subr.bf16.mxu0 %v1498_v0  ;;  %1352 = vmatprep.subr.bf16.mxu1 %v1498_v0  ;;  %v57_v1 = vld [vmem:[%s1800_s2] sm:$0xf]  ;;  %vm184_vm3 = vcmask 1041408   ;;  %vm180_vm4 = vcmask 31744   ;;  %v1279_v26 = vld [vmem:[%s1804_s5 + $0x4] sm:$0x3] }
   0x2   :  { %v116_v2 = vld [vmem:[%s1801_s3] sm:$0xf]  ;;  %v69_v3 = vsel %vm67_vm0, %v57_v1, 0  ;;  %1348 = vmatprep.mubr.msk.bf16.mxu0 %vm1499_vm2, %v1498_v0  ;;  %1354 = vmatprep.mubr.msk.bf16.mxu1 %vm1499_vm2, %v1498_v0  ;;  %v385_v27 = vsel %vm184_vm3, %v1279_v26, 0  ;;  %v1288_v33 = vld [vmem:[%s1806_s6 + $0x4] sm:$0x3] }
   0x3   :  { %v118_v4 = vsel %vm67_vm0, %v116_v2, 0  ;;  %v1492_v5 = vld [vmem:[%s1802_s0] sm:$0xff]   ;;  %1347 = vmatpush3.bf16.msra.mxu0 %v69_v3  ;;  %v687_v34 = vsel %vm184_vm3, %v1288_v33, 0  ;;  %vm477_vm5 = vcmask 1046528   ;;  %vm235_vm6 = vcmask 1040384  }
   0x4   :  { %v1595_v6 = vld [vmem:[%s1803_s1] sm:$0xff]   ;;  %1353 = vmatpush3.bf16.msra.mxu1 %v118_v4  ;;  %1358 = vmatprep.subr.bf16.mxu0 %v1498_v0 }
   0x5   :  { %v174_v7 = vld [vmem:[%s1804_s5] sm:$0x3]  ;;  %488 = vrot.lane.b32.xlu0 %v1595_v6, %s1500_s21  ;;  %1364 = vmatprep.subr.bf16.mxu1 %v1498_v0  ;;  %v1276_v17 = vld [vmem:[%s1804_s5 + $0x2] sm:$0x3] }
   0x6   :  { %v186_v8 = vsel %vm184_vm3, %v174_v7, 0  ;;  %1349 = vmatmul.mubr.msk.bf16.vlgmr.msra.gmra.mrb[0].mxu0 %vm63_vm1, %v1492_v5  ;;  %v1267_v9 = vld [vmem:[%s1805_s4] ss:$0 sm:$0xff]  ;;  %v294_v25 = vsel %vm184_vm3, %v1276_v17, 0  ;;  %v1285_v30 = vld [vmem:[%s1806_s6 + $0x2] sm:$0x3] }
   0x7   :  { %1355 = vmatmul.mubr.msk.bf16.vlgmr.msra.gmra.mrb[0].mxu1 %vm63_vm1, %v1492_v5  ;;  %1359 = vmatpush3.bf16.msra.mxu0 %v186_v8  ;;  %v482_v28 = vld [vmem:[%s1806_s6] sm:$0x3]  ;;  %v596_v31 = vsel %vm184_vm3, %v1285_v30, 0 }
   0x8   :  { %1365 = vmatpush3.bf16.msra.mxu1 %v186_v8  ;;  %1360 = vmatprep.mubr.msk.bf16.mxu0 %vm1499_vm2, %v1498_v0  ;;  %v494_v29 = vsel %vm184_vm3, %v482_v28, 0  ;;  %v871_v35 = vld [vmem:[%s1807_s10] sm:$0x3] }
   0x9   :  { %1366 = vmatprep.mubr.msk.bf16.mxu1 %vm1499_vm2, %v1498_v0  ;;  %1370 = vmatprep.subr.bf16.mxu0 %v1498_v0  ;;  %v881_v36 = vsel %vm184_vm3, %v871_v35, 0  ;;  %v1271_v45 = vld [vmem:[%s1808_s7] ss:$0 sm:$0xff] }
   0xa   :  { %1376 = vmatprep.subr.bf16.mxu1 %v1498_v0 }
  0x77   :  { %v489_v32 = vpop.permute.xlu0 %488 }
  0xd9   :  { %v105_v10 = vpop.f32.mrb[0].mxu0 }
  0xda   :  { %v154_v11 = vpop.f32.mrb[0].mxu1  ;;  %v112_v12 = vadd.f32 %v1267_v9, %v105_v10  ;;  %v1350_v13 = vpop.f32.mrb[1].mxu0 }
  0xdb   :  { %v1356_v14 = vpop.f32.mrb[1].mxu1  ;;  %v108_v15 = vpop.f32.mrb[2].mxu0  ;;  %v161_v18 = vadd.f32 %v1267_v9, %v154_v11 }
  0xdc   :  { %v157_v16 = vpop.f32.mrb[2].mxu1  ;;  %v113_v19 = vadd.f32 %v1267_v9, %v108_v15  ;;  %v1351_v22 = vpop.f32.mrb[3].mxu0 }
  0xdd   :  { %v162_v20 = vadd.f32 %v1267_v9, %v157_v16  ;;  %v1357_v21 = vpop.f32.mrb[3].mxu1 }
  0xde   :  { %v1303_v23 = vpack.c.bf16 %v113_v19, %v112_v12 }
  0xdf   :  { %v1302_v24 = vpack.c.bf16 %v162_v20, %v161_v18 }
  0xe0   :  { %1367 = vmatmul.mubr.msk.bf16.vlgmr.msra.gmra.mrb[4].mxu1 %vm180_vm4, %v1303_v23 }
  0xe1   :  { %1361 = vmatmul.mubr.msk.bf16.vlgmr.msra.gmra.mrb[4].mxu0 %vm180_vm4, %v1302_v24  ;;  %1377 = vmatpush3.bf16.msra.mxu1 %v294_v25 }
  0xe2   :  { %1371 = vmatpush3.bf16.msra.mxu0 %v294_v25  ;;  %1372 = vmatprep.mubr.msk.bf16.mxu0 %vm1499_vm2, %v1498_v0 }
  0xe3   :  { %1378 = vmatprep.mubr.msk.bf16.mxu1 %vm1499_vm2, %v1498_v0  ;;  %1382 = vmatprep.subr.bf16.mxu0 %v1498_v0 }
  0xe4   :  { %1388 = vmatprep.subr.bf16.mxu1 %v1498_v0 }
  0xe8   :  { %1379 = vmatmul.mubr.msk.bf16.vlgmr.msra.gmra.mrb[8].mxu1 %vm180_vm4, %v1302_v24 }
  0xe9   :  { %1373 = vmatmul.mubr.msk.bf16.vlgmr.msra.gmra.mrb[8].mxu0 %vm180_vm4, %v1303_v23  ;;  %1389 = vmatpush3.bf16.msra.mxu1 %v385_v27 }
  0xea   :  { %1383 = vmatpush3.bf16.msra.mxu0 %v385_v27  ;;  %1390 = vmatprep.mubr.msk.bf16.mxu1 %vm1499_vm2, %v1498_v0 }
  0xeb   :  { %1384 = vmatprep.mubr.msk.bf16.mxu0 %vm1499_vm2, %v1498_v0  ;;  %1394 = vmatprep.subr.bf16.mxu0 %v1498_v0 }
  0xec   :  { %1400 = vmatprep.subr.bf16.mxu1 %v1498_v0 }
  0xf0   :  { %1391 = vmatmul.mubr.msk.bf16.vlgmr.msra.gmra.mrb[12].mxu1 %vm180_vm4, %v1303_v23 }
  0xf1   :  { %1401 = vmatpush3.bf16.msra.mxu1 %v494_v29  ;;  %1402 = vmatprep.mubr.msk.bf16.mxu1 %vm1499_vm2, %v1498_v0 }
  0xf2   :  { %1412 = vmatprep.subr.bf16.mxu1 %v1498_v0 }
  0xf5   :  { %1385 = vmatmul.mubr.msk.bf16.vlgmr.msra.gmra.mrb[8].mxu0 %vm180_vm4, %v1302_v24 }
  0xf6   :  { %1395 = vmatpush3.bf16.msra.mxu0 %v494_v29  ;;  %1396 = vmatprep.mubr.msk.bf16.mxu0 %vm1499_vm2, %v1498_v0 }
  0xf7   :  { %1406 = vmatprep.subr.bf16.mxu0 %v1498_v0 }
  0xf8   :  { %1403 = vmatmul.mubr.msk.bf16.vlgmr.msra.gmra.mrb[16].mxu1 %vm180_vm4, %v1595_v6 }
  0xf9   :  { %1413 = vmatpush3.bf16.msra.mxu1 %v596_v31  ;;  %1414 = vmatprep.mubr.msk.bf16.mxu1 %vm1499_vm2, %v1498_v0 }
  0xfa   :  { %1424 = vmatprep.subr.bf16.mxu1 %v1498_v0 }
  0xfd   :  { %1397 = vmatmul.mubr.msk.bf16.vlgmr.msra.gmra.mrb[12].mxu0 %vm180_vm4, %v489_v32 }
  0xfe   :  { %1407 = vmatpush3.bf16.msra.mxu0 %v596_v31  ;;  %1408 = vmatprep.mubr.msk.bf16.mxu0 %vm1499_vm2, %v1498_v0 }
  0xff   :  { %1418 = vmatprep.subr.bf16.mxu0 %v1498_v0 }
 0x100   :  { %1415 = vmatmul.mubr.msk.bf16.vlgmr.msra.gmra.mrb[20].mxu1 %vm180_vm4, %v489_v32 }
 0x101   :  { %1425 = vmatpush3.bf16.msra.mxu1 %v687_v34  ;;  %1426 = vmatprep.mubr.msk.bf16.mxu1 %vm1499_vm2, %v1498_v0 }
 0x102   :  { %1436 = vmatprep.subr.bf16.mxu1 %v1498_v0 }
 0x105   :  { %1409 = vmatmul.mubr.msk.bf16.vlgmr.msra.gmra.mrb[8].mxu0 %vm180_vm4, %v1595_v6 }
 0x106   :  { %1419 = vmatpush3.bf16.msra.mxu0 %v687_v34  ;;  %1420 = vmatprep.mubr.msk.bf16.mxu0 %vm1499_vm2, %v1498_v0 }
 0x107   :  { %1430 = vmatprep.subr.bf16.mxu0 %v1498_v0 }
 0x108   :  { %1427 = vmatmul.mubr.msk.bf16.vlgmr.msra.gmra.mrb[24].mxu1 %vm180_vm4, %v1595_v6 }
 0x109   :  { %1438 = vmatprep.mubr.msk.bf16.mxu1 %vm1499_vm2, %v1498_v0  ;;  %1437 = vmatpush3.bf16.msra.mxu1 %v881_v36 }
 0x10a   :  { %1448 = vmatprep.subr.bf16.mxu1 %v1498_v0 }
 0x111   :  { %1421 = vmatmul.mubr.msk.bf16.vlgmr.msra.gmra.mrb[8].mxu0 %vm180_vm4, %v489_v32 }
 0x112   :  { %1432 = vmatprep.mubr.msk.bf16.mxu0 %vm1499_vm2, %v1498_v0  ;;  %1431 = vmatpush3.bf16.msra.mxu0 %v881_v36 }
 0x113   :  { %1442 = vmatprep.subr.bf16.mxu0 %v1498_v0 }
 0x1b3   :  { %v282_v38 = vpop.f32.mrb[4].mxu1 }
 0x1b4   :  { %v222_v37 = vpop.f32.mrb[4].mxu0  ;;  %v1368_v40 = vpop.f32.mrb[5].mxu1  ;;  %v289_v46 = vadd.f32 %v1271_v45, %v282_v38 }
 0x1b5   :  { %v1362_v39 = vpop.f32.mrb[5].mxu0  ;;  %v285_v42 = vpop.f32.mrb[6].mxu1  ;;  %v231_v1 = vrot.slane %v222_v37, 7 }
 0x1b6   :  { %v225_v41 = vpop.f32.mrb[6].mxu0  ;;  %v1369_v44 = vpop.f32.mrb[7].mxu1  ;;  %v290_v48 = vadd.f32 %v1271_v45, %v285_v42 }
 0x1b7   :  { %v1363_v43 = vpop.f32.mrb[7].mxu0  ;;  %v232_v3 = vrot.slane %v225_v41, 7  ;;  %v236_v7 = vsel %vm235_vm6, 0.0, %v231_v1 }
 0x1b8   :  { %v238_v14 = vadd.f32 %v1271_v45, %v236_v7 }
 0x1b9   :  { %v237_v11 = vsel %vm235_vm6, 0.0, %v232_v3 }
 0x1ba   :  { %v239_v19 = vadd.f32 %v1271_v45, %v237_v11 }
 0x1bb   :  { %v373_v47 = vpop.f32.mrb[8].mxu1 }
 0x1bc   :  { %v380_v49 = vadd.f32 %v373_v47, %v289_v46  ;;  %v1380_v50 = vpop.f32.mrb[9].mxu1 }
 0x1bd   :  { %v376_v51 = vpop.f32.mrb[10].mxu1 }
 0x1be   :  { %v381_v52 = vadd.f32 %v376_v51, %v290_v48  ;;  %v1381_v53 = vpop.f32.mrb[11].mxu1 }
 0x1c3   :  { %v464_v54 = vpop.f32.mrb[12].mxu1 }
 0x1c4   :  { %v473_v55 = vrot.slane %v464_v54, 1  ;;  %v1392_v56 = vpop.f32.mrb[13].mxu1 }
 0x1c5   :  { %v467_v57 = vpop.f32.mrb[14].mxu1 }
 0x1c6   :  { %v478_v58 = vsel %vm477_vm5, %v473_v55, 0.0  ;;  %v474_v59 = vrot.slane %v467_v57, 1  ;;  %v1393_v60 = vpop.f32.mrb[15].mxu1 }
 0x1c7   :  { %v480_v61 = vadd.f32 %v478_v58, %v380_v49 }
 0x1c8   :  { %v479_v62 = vsel %vm477_vm5, %v474_v59, 0.0 }
 0x1c9   :  { %v481_v63 = vadd.f32 %v479_v62, %v381_v52 }
 0x1cb   :  { %v584_v2 = vpop.f32.mrb[16].mxu1 }
 0x1cc   :  { %v591_v4 = vadd.f32 %v584_v2, %v480_v61  ;;  %v1404_v5 = vpop.f32.mrb[17].mxu1 }
 0x1cd   :  { %v587_v6 = vpop.f32.mrb[18].mxu1 }
 0x1ce   :  { %v592_v8 = vadd.f32 %v587_v6, %v481_v63  ;;  %v1405_v9 = vpop.f32.mrb[19].mxu1 }
 0x1d0   :  { %v530_v10 = vpop.f32.mrb[12].mxu0 }
 0x1d1   :  { %v539_v12 = vrot.slane %v530_v10, 7  ;;  %v1398_v13 = vpop.f32.mrb[13].mxu0 }
 0x1d2   :  { %v533_v15 = vpop.f32.mrb[14].mxu0 }
 0x1d3   :  { %v543_v16 = vsel %vm235_vm6, 0.0, %v539_v12  ;;  %v540_v17 = vrot.slane %v533_v15, 7  ;;  %v1399_v18 = vpop.f32.mrb[15].mxu0  ;;  %v675_v20 = vpop.f32.mrb[20].mxu1 }
 0x1d4   :  { %v1466_v21 = vadd.f32 %v543_v16, %v238_v14  ;;  %v682_v23 = vadd.f32 %v675_v20, %v591_v4  ;;  %v1416_v24 = vpop.f32.mrb[21].mxu1 }
 0x1d5   :  { %v544_v22 = vsel %vm235_vm6, 0.0, %v540_v17  ;;  %v678_v25 = vpop.f32.mrb[22].mxu1 }
 0x1d6   :  { %v1468_v26 = vadd.f32 %v544_v22, %v239_v19  ;;  %v683_v27 = vadd.f32 %v678_v25, %v592_v8  ;;  %v1417_v28 = vpop.f32.mrb[23].mxu1 }
 0x1db   :  { %v766_v29 = vpop.f32.mrb[24].mxu1 }
 0x1dc   :  { %v775_v30 = vrot.slane %v766_v29, 1  ;;  %v1428_v31 = vpop.f32.mrb[25].mxu1 }
 0x1dd   :  { %v769_v32 = vpop.f32.mrb[26].mxu1 }
 0x1de   :  { %v779_v33 = vsel %vm477_vm5, %v775_v30, 0.0  ;;  %v776_v34 = vrot.slane %v769_v32, 1  ;;  %v1429_v35 = vpop.f32.mrb[27].mxu1  ;;  %v838_v30 = vlaneseq  ;;  %v833_v32 = vld [vmem:[%s1809_s8] sm:$0x1] }
 0x1df   :  { %v1700_v36 = vadd.f32 %v779_v33, %v682_v23 }
 0x1e0   :  { %v780_v37 = vsel %vm477_vm5, %v776_v34, 0.0  ;;  %v839_v31 = vshrl.u32 %v838_v30, 7 }
 0x1e1   :  { %v813_v38 = vmul.f32 %v1700_v36, %v1700_v36  ;;  %v1705_v39 = vadd.f32 %v780_v37, %v683_v27  ;;  %v792_v40 = vsel %vm180_vm4, %v1700_v36, 0.0  ;;  %v835_v37 = vld [vmem:[%s1810_s9] sm:$0x1] }
 0x1e2   :  { %v1722_v33 = vsub.s32 0, %v839_v31 }
 0x1e3   :  { %v793_v41 = vsel %vm180_vm4, %v1705_v39, 0.0  ;;  %v814_v42 = vmul.f32 %v1705_v39, %v1705_v39  ;;  %v815_v47 = vsel %vm180_vm4, %v813_v38, 0.0 }
 0x1e4   :  { %v723_v43 = vpop.f32.mrb[8].mxu0  ;;  %v794_v44 = vadd.f32 %v793_v41, %v792_v40 }
 0x1e5   :  { %v1467_v45 = vadd.f32 %v1466_v21, %v723_v43  ;;  %v1422_v46 = vpop.f32.mrb[9].mxu0  ;;  %v816_v48 = vsel %vm180_vm4, %v814_v42, 0.0 }
 0x1e6   :  { %v726_v49 = vpop.f32.mrb[10].mxu0  ;;  %v795_v50 = vrot.slane %v794_v44, 4  ;;  %v817_v51 = vadd.f32 %v816_v48, %v815_v47 }
 0x1e7   :  { %v1423_v52 = vpop.f32.mrb[11].mxu0  ;;  %v802_v53 = vmul.f32 %v1467_v45, %v1467_v45  ;;  %v1469_v54 = vadd.f32 %v1468_v26, %v726_v49  ;;  %v783_v57 = vsel %vm180_vm4, %v1467_v45, 0.0 }
 0x1e8   :  { %v796_v55 = vadd.f32 %v795_v50, %v794_v44  ;;  %v818_v56 = vrot.slane %v817_v51, 4  ;;  %v1296_v52 = vld [vmem:[%s1807_s10 + $0x2] sm:$0x3] }
 0x1e9   :  { %v784_v58 = vsel %vm180_vm4, %v1469_v54, 0.0  ;;  %v803_v59 = vmul.f32 %v1469_v54, %v1469_v54  ;;  %v804_v63 = vsel %vm180_vm4, %v802_v53, 0.0 }
 0x1ea   :  { %v797_v60 = vrot.slane %v796_v55, 2  ;;  %v819_v61 = vadd.f32 %v818_v56, %v817_v51  ;;  %v785_v62 = vadd.f32 %v784_v58, %v783_v57 }
 0x1eb   :  { %v805_v1 = vsel %vm180_vm4, %v803_v59, 0.0 }
 0x1ec   :  { %v820_v2 = vrot.slane %v819_v61, 2  ;;  %v786_v3 = vrot.slane %v785_v62, 4  ;;  %v806_v4 = vadd.f32 %v805_v1, %v804_v63  ;;  %v798_v5 = vadd.f32 %v797_v60, %v796_v55 }
 0x1ee   :  { %v787_v6 = vadd.f32 %v786_v3, %v785_v62  ;;  %v807_v7 = vrot.slane %v806_v4, 4  ;;  %v821_v8 = vadd.f32 %v820_v2, %v819_v61  ;;  %v799_v11 = vrot.slane %v798_v5, 1 }
 0x1f0   :  { %v788_v9 = vrot.slane %v787_v6, 2  ;;  %v808_v10 = vadd.f32 %v807_v7, %v806_v4  ;;  %v822_v14 = vrot.slane %v821_v8, 1  ;;  %v800_v17 = vadd.f32 %v799_v11, %v798_v5  ;;  %v1291_v4 = vld [vmem:[%s1811_s11] ss:$0 sm:$0xff] }
 0x1f2   :  { %v789_v12 = vadd.f32 %v788_v9, %v787_v6  ;;  %v809_v13 = vrot.slane %v808_v10, 2  ;;  %v823_v20 = vadd.f32 %v822_v14, %v821_v8 }
 0x1f4   :  { %v790_v15 = vrot.slane %v789_v12, 1  ;;  %v810_v16 = vadd.f32 %v809_v13, %v808_v10 }
 0x1f6   :  { %v791_v18 = vadd.f32 %v790_v15, %v789_v12  ;;  %v811_v19 = vrot.slane %v810_v16, 1 }
 0x1f8   :  { %v801_v21 = vadd.f32 %v800_v17, %v791_v18  ;;  %v812_v22 = vadd.f32 %v811_v19, %v810_v16 }
 0x1fa   :  { %v824_v23 = vadd.f32 %v823_v20, %v812_v22  ;;  %v826_v24 = vmul.f32 0.03125, %v801_v21 }
 0x1fc   :  { %v827_v25 = vmul.f32 0.03125, %v824_v23  ;;  %v828_v26 = vmul.f32 %v826_v24, %v826_v24 }
 0x1fe   :  { %v829_v27 = vsub.f32 %v827_v25, %v828_v26 }
 0x200   :  { %v830_v28 = vmax.f32 %v829_v27, 0.0 }
 0x202   :  { %v831_v29 = vadd.f32 1e-05, %v830_v28 }
 0x204   :  { %1494 = vrsqrt.f32 %v831_v29 }
 0x20e   :  { %v1495_v34 = vpop.eup %1494 }
 0x20f   :  { %v834_v35 = vmul.f32 %v1495_v34, %v833_v32 }
 0x211   :  { %v836_v38 = vmul.f32 %v834_v35, %v826_v24  ;;  %v841_v40 = vrot.slane %v834_v35, %v1722_v33 }
 0x213   :  { %v837_v41 = vsub.f32 %v835_v37, %v836_v38  ;;  %v842_v42 = vmul.f32 %v1467_v45, %v841_v40  ;;  %v843_v43 = vmul.f32 %v1469_v54, %v841_v40  ;;  %v854_v44 = vmul.f32 %v841_v40, %v1700_v36 }
 0x214   :  { %v855_v46 = vmul.f32 %v841_v40, %v1705_v39  ;;  %v988_v36 = vsel %vm184_vm3, %v1296_v52, 0  ;;  %v1299_v39 = vld [vmem:[%s1807_s10 + $0x4] sm:$0x3] }
 0x215   :  { %v848_v47 = vrot.slane %v837_v41, %v1722_v33  ;;  %v1079_v58 = vsel %vm184_vm3, %v1299_v39, 0 }
 0x217   :  { %v850_v48 = vadd.f32 %v848_v47, %v842_v42  ;;  %v851_v49 = vadd.f32 %v848_v47, %v843_v43  ;;  %v856_v50 = vadd.f32 %v854_v44, %v848_v47  ;;  %v857_v51 = vadd.f32 %v855_v46, %v848_v47 }
 0x219   :  { %v852_v53 = vmax.f32 %v850_v48, 0.0  ;;  %v853_v55 = vmax.f32 %v851_v49, 0.0  ;;  %v858_v56 = vmax.f32 %v856_v50, 0.0  ;;  %v859_v57 = vmax.f32 %v857_v51, 0.0 }
 0x21b   :  { %v1305_v45 = vpack.c.bf16 %v853_v55, %v852_v53  ;;  %v1304_v54 = vpack.c.bf16 %v859_v57, %v858_v56 }
 0x21d   :  { %1433 = vmatmul.mubr.msk.bf16.vlgmr.msra.gmra.mrb[16].mxu0 %vm180_vm4, %v1304_v54  ;;  %1439 = vmatmul.mubr.msk.bf16.vlgmr.msra.gmra.mrb[28].mxu1 %vm180_vm4, %v1305_v45 }
 0x21e   :  { %1443 = vmatpush3.bf16.msra.mxu0 %v988_v36  ;;  %1449 = vmatpush3.bf16.msra.mxu1 %v988_v36 }
 0x21f   :  { %1444 = vmatprep.mubr.msk.bf16.mxu0 %vm1499_vm2, %v1498_v0  ;;  %1450 = vmatprep.mubr.msk.bf16.mxu1 %vm1499_vm2, %v1498_v0 }
 0x220   :  { %1454 = vmatprep.subr.bf16.mxu0 %v1498_v0  ;;  %1460 = vmatprep.subr.bf16.mxu1 %v1498_v0 }
 0x225   :  { %1445 = vmatmul.mubr.msk.bf16.vlgmr.msra.gmra.mrb[20].mxu0 %vm180_vm4, %v1305_v45  ;;  %1451 = vmatmul.mubr.msk.bf16.vlgmr.msra.gmra.mrb[32].mxu1 %vm180_vm4, %v1304_v54 }
 0x226   :  { %1455 = vmatpush3.bf16.msra.mxu0 %v1079_v58  ;;  %1461 = vmatpush3.bf16.msra.mxu1 %v1079_v58 }
 0x227   :  { %1462 = vmatprep.mubr.msk.bf16.mxu1 %vm1499_vm2, %v1498_v0  ;;  %1456 = vmatprep.mubr.msk.bf16.mxu0 %vm1499_vm2, %v1498_v0 }
 0x22d   :  { %1463 = vmatmul.mubr.msk.bf16.vlgmr.msra.gmra.mrb[36].mxu1 %vm180_vm4, %v1305_v45 }
 0x231   :  { %1457 = vmatmul.mubr.msk.bf16.vlgmr.msra.gmra.mrb[20].mxu0 %vm180_vm4, %v1304_v54 }
 0x2f0   :  { %v917_v59 = vpop.f32.mrb[16].mxu0  ;;  %v976_v60 = vpop.f32.mrb[28].mxu1 }
 0x2f1   :  { %v1434_v61 = vpop.f32.mrb[17].mxu0  ;;  %v1440_v62 = vpop.f32.mrb[29].mxu1  ;;  %v983_v5 = vadd.f32 %v1291_v4, %v976_v60  ;;  %v926_v12 = vrot.slane %v917_v59, 7 }
 0x2f2   :  { %v920_v63 = vpop.f32.mrb[18].mxu0  ;;  %v979_v1 = vpop.f32.mrb[30].mxu1 }
 0x2f3   :  { %v1435_v2 = vpop.f32.mrb[19].mxu0  ;;  %v1441_v3 = vpop.f32.mrb[31].mxu1  ;;  %v984_v7 = vadd.f32 %v1291_v4, %v979_v1  ;;  %v927_v13 = vrot.slane %v920_v63, 7  ;;  %v930_v14 = vsel %vm235_vm6, 0.0, %v926_v12 }
 0x2f4   :  { %v932_v23 = vadd.f32 %v1291_v4, %v930_v14 }
 0x2f5   :  { %v931_v18 = vsel %vm235_vm6, 0.0, %v927_v13 }
 0x2f6   :  { %v933_v29 = vadd.f32 %v1291_v4, %v931_v18 }
 0x2f8   :  { %v1067_v6 = vpop.f32.mrb[32].mxu1 }
 0x2f9   :  { %v1074_v0 = vadd.f32 %v1067_v6, %v983_v5  ;;  %v1452_v8 = vpop.f32.mrb[33].mxu1 }
 0x2fa   :  { %v1070_v9 = vpop.f32.mrb[34].mxu1 }
 0x2fb   :  { %v1075_v10 = vadd.f32 %v1070_v9, %v984_v7  ;;  %v1453_v11 = vpop.f32.mrb[35].mxu1 }
 0x300   :  { %v1158_v15 = vpop.f32.mrb[36].mxu1 }
 0x301   :  { %v1167_v16 = vrot.slane %v1158_v15, 1  ;;  %v1464_v17 = vpop.f32.mrb[37].mxu1 }
 0x302   :  { %v1161_v19 = vpop.f32.mrb[38].mxu1 }
 0x303   :  { %v1171_v20 = vsel %vm477_vm5, %v1167_v16, 0.0  ;;  %v1168_v21 = vrot.slane %v1161_v19, 1  ;;  %v1465_v22 = vpop.f32.mrb[39].mxu1  ;;  %v1224_v19 = vld [vmem:[%s1812_s12] sm:$0x1]  ;;  %s1501_s12 = smov 4  }
 0x304   :  { %v1761_v24 = vadd.f32 %v1171_v20, %v1074_v0  ;;  %v1115_v25 = vpop.f32.mrb[20].mxu0  ;;  %v1226_v22 = vld [vmem:[%s1813_s13] sm:$0x1] }
 0x305   :  { %v1172_v26 = vsel %vm477_vm5, %v1168_v21, 0.0  ;;  %v1764_v27 = vadd.f32 %v1115_v25, %v932_v23  ;;  %v1458_v28 = vpop.f32.mrb[21].mxu0 }
 0x306   :  { %v1205_v30 = vmul.f32 %v1761_v24, %v1761_v24  ;;  %v1174_v31 = vadd.f32 %v1172_v26, %v1075_v10  ;;  %v1118_v32 = vpop.f32.mrb[22].mxu0  ;;  %v1184_v38 = vsel %vm180_vm4, %v1761_v24, 0.0 }
 0x307   :  { %v1194_v34 = vmul.f32 %v1764_v27, %v1764_v27  ;;  %v1471_v35 = vadd.f32 %v1118_v32, %v933_v29  ;;  %v1459_v37 = vpop.f32.mrb[23].mxu0  ;;  %v1175_v43 = vsel %vm180_vm4, %v1764_v27, 0.0 }
 0x308   :  { %v1185_v40 = vsel %vm180_vm4, %v1174_v31, 0.0  ;;  %v1206_v41 = vmul.f32 %v1174_v31, %v1174_v31  ;;  %v1207_v47 = vsel %vm180_vm4, %v1205_v30, 0.0 }
 0x309   :  { %v1186_v42 = vadd.f32 %v1185_v40, %v1184_v38  ;;  %v1176_v44 = vsel %vm180_vm4, %v1471_v35, 0.0  ;;  %v1195_v46 = vmul.f32 %v1471_v35, %v1471_v35  ;;  %v1196_v52 = vsel %vm180_vm4, %v1194_v34, 0.0 }
 0x30a   :  { %v1208_v48 = vsel %vm180_vm4, %v1206_v41, 0.0  ;;  %v1177_v49 = vadd.f32 %v1176_v44, %v1175_v43 }
 0x30b   :  { %v1187_v50 = vrot.slane %v1186_v42, 4  ;;  %v1209_v51 = vadd.f32 %v1208_v48, %v1207_v47  ;;  %v1197_v53 = vsel %vm180_vm4, %v1195_v46, 0.0 }
 0x30c   :  { %v1178_v55 = vrot.slane %v1177_v49, 4  ;;  %v1198_v56 = vadd.f32 %v1197_v53, %v1196_v52 }
 0x30d   :  { %v1188_v57 = vadd.f32 %v1187_v50, %v1186_v42  ;;  %v1210_v45 = vrot.slane %v1209_v51, 4 }
 0x30e   :  { %v1179_v54 = vadd.f32 %v1178_v55, %v1177_v49  ;;  %v1199_v36 = vrot.slane %v1198_v56, 4 }
 0x30f   :  { %v1189_v39 = vrot.slane %v1188_v57, 2  ;;  %v1211_v58 = vadd.f32 %v1210_v45, %v1209_v51 }
 0x310   :  { %v1180_v59 = vrot.slane %v1179_v54, 2  ;;  %v1200_v60 = vadd.f32 %v1199_v36, %v1198_v56 }
 0x311   :  { %v1190_v61 = vadd.f32 %v1189_v39, %v1188_v57  ;;  %v1212_v62 = vrot.slane %v1211_v58, 2 }
 0x312   :  { %v1181_v63 = vadd.f32 %v1180_v59, %v1179_v54  ;;  %v1201_v1 = vrot.slane %v1200_v60, 2 }
 0x313   :  { %v1191_v2 = vrot.slane %v1190_v61, 1  ;;  %v1213_v3 = vadd.f32 %v1212_v62, %v1211_v58 }
 0x314   :  { %v1182_v4 = vrot.slane %v1181_v63, 1  ;;  %v1202_v5 = vadd.f32 %v1201_v1, %v1200_v60 }
 0x315   :  { %v1192_v6 = vadd.f32 %v1191_v2, %v1190_v61  ;;  %v1214_v7 = vrot.slane %v1213_v3, 1 }
 0x316   :  { %v1183_v0 = vadd.f32 %v1182_v4, %v1181_v63  ;;  %v1203_v8 = vrot.slane %v1202_v5, 1 }
 0x317   :  { %v1215_v9 = vadd.f32 %v1214_v7, %v1213_v3 }
 0x318   :  { %v1193_v10 = vadd.f32 %v1192_v6, %v1183_v0  ;;  %v1204_v11 = vadd.f32 %v1203_v8, %v1202_v5 }
 0x31a   :  { %v1216_v12 = vadd.f32 %v1215_v9, %v1204_v11  ;;  %v1217_v13 = vmul.f32 0.03125, %v1193_v10 }
 0x31c   :  { %v1218_v14 = vmul.f32 0.03125, %v1216_v12  ;;  %v1219_v15 = vmul.f32 %v1217_v13, %v1217_v13 }
 0x31e   :  { %v1220_v16 = vsub.f32 %v1218_v14, %v1219_v15 }
 0x320   :  { %v1221_v17 = vmax.f32 %v1220_v16, 0.0 }
 0x322   :  { %v1222_v18 = vadd.f32 1e-05, %v1221_v17 }
 0x324   :  { %1496 = vrsqrt.f32 %v1222_v18 }
 0x32e   :  { %v1497_v20 = vpop.eup %1496 }
 0x32f   :  { %v1225_v21 = vmul.f32 %v1497_v20, %v1224_v19 }
 0x331   :  { %v1232_v23 = vrot.slane %v1225_v21, %v1722_v33  ;;  %v1227_v25 = vmul.f32 %v1225_v21, %v1217_v13 }
 0x333   :  { %v1234_v26 = vmul.f32 %v1471_v35, %v1232_v23  ;;  %v1228_v28 = vsub.f32 %v1226_v22, %v1227_v25  ;;  %v1246_v29 = vmul.f32 %v1232_v23, %v1174_v31  ;;  %v1245_v30 = vmul.f32 %v1232_v23, %v1761_v24 }
 0x334   :  { %v1233_v32 = vmul.f32 %v1764_v27, %v1232_v23 }
 0x335   :  { %v1239_v34 = vrot.slane %v1228_v28, %v1722_v33 }
 0x337   :  { %v1248_v37 = vadd.f32 %v1246_v29, %v1239_v34  ;;  %v1247_v38 = vadd.f32 %v1245_v30, %v1239_v34  ;;  %v1242_v40 = vadd.f32 %v1239_v34, %v1234_v26  ;;  %v1241_v41 = vadd.f32 %v1239_v34, %v1233_v32 }
 0x339   :  { %v1250_v42 = vmax.f32 %v1248_v37, 0.0  ;;  %v1249_v43 = vmax.f32 %v1247_v38, 0.0  ;;  %v1244_v44 = vmax.f32 %v1242_v40, 0.0  ;;  %v1243_v46 = vmax.f32 %v1241_v41, 0.0 }
 0x33b   :  { %1255 = vrot.lane.b32.xlu1 %v1250_v42, %s1501_s12  ;;  %1253 = vrot.lane.b32.xlu0 %v1249_v43, %s1501_s12 }
 0x3ad   :  { %v1256_v35 = vpop.permute.xlu1 %1255  ;;  %v1254_v47 = vpop.permute.xlu0 %1253 }
 0x3ae   :  { %v1260_v31 = vsel %vm180_vm4, %v1244_v44, %v1256_v35  ;;  %v1259_v24 = vsel %vm180_vm4, %v1243_v46, %v1254_v47 }
 0x3af   :  { %1262 = vst.msk [vmem:[%s1814_s14 + $0x8] sm:$0xff] %vm63_vm1, %v1260_v31  ;;  %1261 = vst.msk [vmem:[%s1814_s14] sm:$0xff] %vm63_vm1, %v1259_v24 }

</bundles_post_ra>
